<compile_context>
chip_gen: v7x
topology: tpu7x:2x2x1
jax: 0.10.0
libtpu: 0.0.40
codegen_flags: <defaults>
</compile_context>

<pallas_src>
import functools

import jax
import jax.numpy as jnp
from jax.experimental import pallas as pl
from jax.experimental.pallas import tpu as pltpu


# ----------------------------------------------------------------------------
# Fused per-batch kernel
# ----------------------------------------------------------------------------
def fused_kernel(main_w_ref, unet_w_ref, cls_w_ref, x_ref, o_ref, cls_ref):
    x = x_ref[0]                                   # (C, H, W) float32
    C, H, W = x.shape

    row_idx = jax.lax.broadcasted_iota(jnp.int32, (H, W), 0)
    col_idx = jax.lax.broadcasted_iota(jnp.int32, (H, W), 1)

    def shift2d(a, dr, dc):
        """a[i+dr, j+dc] with zero padding, via XLU roll + boundary mask."""
        out = a
        if dr:
            out = pltpu.roll(out, (-dr) % H, 0)
            valid = (row_idx < H - dr) if dr > 0 else (row_idx >= -dr)
            out = jnp.where(valid, out, 0.0)
        if dc:
            out = pltpu.roll(out, (-dc) % W, 1)
            valid = (col_idx < W - dc) if dc > 0 else (col_idx >= -dc)
            out = jnp.where(valid, out, 0.0)
        return out

    # ---- ResnetCls stand-in: global average pool + linear (C -> NC) --------
    cls_w = cls_w_ref[...]                         # (C+1, NC); row C is bias
    inv_hw = 1.0 / (H * W)
    logits = cls_w[C:C + 1, :]                     # (1, NC) bias row
    for c in range(C):
        m = jnp.sum(x[c], keepdims=True) * inv_hw  # (1, 1) channel mean
        logits = logits + m * cls_w[c:c + 1, :]
    cls_ref[0] = logits                            # (1, NC)

    # ---- GradLayer (exact semantics) ----------------------------------------
    if C == 3:
        g = (x[0] * (65.738 / 256.0)
             + x[1] * (129.057 / 256.0)
             + x[2] * (25.064 / 256.0))            # (H, W) grayscale
    else:
        g = x[0]
    # kernel_v = [[0,-1,0],[0,0,0],[0,1,0]] -> g[i+1,j] - g[i-1,j]
    x_v = shift2d(g, 1, 0) - shift2d(g, -1, 0)
    # kernel_h = [[0,0,0],[-1,0,1],[0,0,0]] -> g[i,j+1] - g[i,j-1]
    x_h = shift2d(g, 0, 1) - shift2d(g, 0, -1)
    edge = jnp.sqrt(x_v * x_v + x_h * x_h + 1e-6)

    # ---- frozen main_model stand-in: 1x1 conv (C -> 1) ----------------------
    om = jnp.full((H, W), main_w_ref[C], jnp.float32)   # bias broadcast once
    for c in range(C):
        om = om + main_w_ref[c] * x[c]

    # ---- additive UNet(2,1) stand-in: 3x3 conv, padding=1 -------------------
    # "concat" of (edge, om) happens purely in registers.
    chans = (edge, om)
    acc = jnp.full((H, W), unet_w_ref[2 * 9], jnp.float32)   # bias broadcast once
    for ci in range(2):
        a = chans[ci]
        for kh in range(3):
            for kw in range(3):
                w = unet_w_ref[(ci * 3 + kh) * 3 + kw]
                acc = acc + w * shift2d(a, kh - 1, kw - 1)
    o_ref[0, 0] = acc


# ----------------------------------------------------------------------------
# Mask2Mask forward
# ----------------------------------------------------------------------------
def init_params(key, c_in, num_classes):
    k1, k2, k3 = jax.random.split(key, 3)
    # main_model stand-in: 1x1 conv C->1 -> (C weights + 1 bias), flat, SMEM
    main_w = 0.1 * jax.random.normal(k1, (c_in + 1,), jnp.float32)
    # additive UNet stand-in: 3x3 conv 2->1 -> (2*9 weights + 1 bias), flat, SMEM
    unet_w = 0.1 * jax.random.normal(k2, (2 * 9 + 1,), jnp.float32)
    # ResnetCls stand-in: linear C->NC, rows 0..C-1 weights, row C bias (VMEM)
    cls_w = 0.1 * jax.random.normal(k3, (c_in + 1, num_classes), jnp.float32)
    return {"main_w": main_w, "unet_w": unet_w, "cls_w": cls_w}


@functools.partial(jax.jit, static_argnames=("num_classes",))
def mask2mask_forward(x, params, num_classes=2):
    B, C, H, W = x.shape
    out_img, out_cls = pl.pallas_call(
        fused_kernel,
        out_shape=(
            jax.ShapeDtypeStruct((B, 1, H, W), jnp.float32),
            jax.ShapeDtypeStruct((B, 1, num_classes), jnp.float32),
        ),
        grid=(B,),
        in_specs=[
            pl.BlockSpec(memory_space=pltpu.MemorySpace.SMEM),   # main_w (flat)
            pl.BlockSpec(memory_space=pltpu.MemorySpace.SMEM),   # unet_w (flat)
            pl.BlockSpec(memory_space=pltpu.MemorySpace.VMEM),   # cls_w (C+1, NC)
            pl.BlockSpec((1, C, H, W), lambda b: (b, 0, 0, 0)),  # x, one image/step
        ],
        out_specs=(
            pl.BlockSpec((1, 1, H, W), lambda b: (b, 0, 0, 0)),
            pl.BlockSpec((1, 1, num_classes), lambda b: (b, 0, 0)),
        ),
        compiler_params=pltpu.CompilerParams(
            dimension_semantics=("parallel",)),
    )(params["main_w"], params["unet_w"], params["cls_w"], x)
    return out_img, out_cls[:, 0, :]


if __name__ == "__main__":
    key = jax.random.PRNGKey(0)
    kx, kp = jax.random.split(key)
    B, C, H, W = 2, 3, 16, 16
    x = jax.random.normal(kx, (B, C, H, W), jnp.float32)
    params = init_params(kp, C, num_classes=2)

    output, cls_result = mask2mask_forward(x, params)
    jax.block_until_ready((output, cls_result))

    assert output.shape == (B, 1, H, W)
    assert cls_result.shape == (B, 2)
    assert bool(jnp.all(jnp.isfinite(output))) and bool(jnp.all(jnp.isfinite(cls_result)))
    print("KERNEL_OK")
</pallas_src>

<mosaic_0001>
module attributes {stable_mosaic.version = 11 : i64} {
  func.func @fused_kernel(%arg0: i32, %arg1: memref<4xf32, #tpu.memory_space<smem>>, %arg2: memref<19xf32, #tpu.memory_space<smem>>, %arg3: memref<4x2xf32, #tpu.memory_space<vmem>>, %arg4: memref<1x3x16x16xf32, #tpu.memory_space<vmem>>, %arg5: memref<1x1x16x16xf32, #tpu.memory_space<vmem>>, %arg6: memref<1x1x2xf32, #tpu.memory_space<vmem>>) attributes {dimension_semantics = [#tpu.dimension_semantics<parallel>], iteration_bounds = array<i64: 2>, scalar_prefetch = 0 : i64, scratch_operands = 0 : i64, tpu.core_type = #tpu.core_type<tc>, window_params = [{transform_indices = @transform_0, window_bounds = array<i64: 4>}, {transform_indices = @transform_1, window_bounds = array<i64: 19>}, {pipeline_mode = #tpu.pipeline_mode<synchronous>, transform_indices = @transform_2, window_bounds = array<i64: 4, 2>}, {transform_indices = @transform_3, window_bounds = array<i64: 1, 3, 16, 16>}, {transform_indices = @transform_4, window_bounds = array<i64: 1, 1, 16, 16>}, {transform_indices = @transform_5, window_bounds = array<i64: 1, 1, 2>}]} {
    %c0 = arith.constant 0 : index
    %c0_0 = arith.constant 0 : index
    %c0_1 = arith.constant 0 : index
    %c0_2 = arith.constant 0 : index
    %0 = vector.load %arg4[%c0, %c0_0, %c0_1, %c0_2] : memref<1x3x16x16xf32, #tpu.memory_space<vmem>>, vector<1x3x16x16xf32>
    %1 = vector.shape_cast %0 : vector<1x3x16x16xf32> to vector<3x16x16xf32>
    %2 = tpu.iota {dimensions = array<i32: 0>} : vector<16x16xi32>
    %3 = tpu.iota {dimensions = array<i32: 1>} : vector<16x16xi32>
    %c0_3 = arith.constant 0 : index
    %c0_4 = arith.constant 0 : index
    %4 = vector.load %arg3[%c0_3, %c0_4] : memref<4x2xf32, #tpu.memory_space<vmem>>, vector<4x2xf32>
    %5 = vector.extract_strided_slice %4 {offsets = [3, 0], sizes = [1, 2], strides = [1, 1]} : vector<4x2xf32> to vector<1x2xf32>
    %6 = vector.extract_strided_slice %1 {offsets = [0, 0, 0], sizes = [1, 16, 16], strides = [1, 1, 1]} : vector<3x16x16xf32> to vector<1x16x16xf32>
    %7 = vector.shape_cast %6 : vector<1x16x16xf32> to vector<16x16xf32>
    %8 = vector.shape_cast %7 : vector<16x16xf32> to vector<1x16x16xf32>
    %cst = arith.constant dense<0.000000e+00> : vector<1xf32>
    %9 = vector.multi_reduction <add>, %8, %cst [1, 2] : vector<1x16x16xf32> to vector<1xf32>
    %10 = vector.shape_cast %9 : vector<1xf32> to vector<1x1x1xf32>
    %11 = vector.extract %10[0, 0, 0] : f32 from vector<1x1x1xf32>
    %12 = vector.broadcast %11 : f32 to vector<1x1xf32>
    %cst_5 = arith.constant 3.906250e-03 : f32
    %13 = vector.broadcast %cst_5 : f32 to vector<1x1xf32>
    %14 = arith.mulf %12, %13 : vector<1x1xf32>
    %15 = vector.extract_strided_slice %4 {offsets = [0, 0], sizes = [1, 2], strides = [1, 1]} : vector<4x2xf32> to vector<1x2xf32>
    %16 = vector.broadcast %14 : vector<1x1xf32> to vector<1x2xf32>
    %17 = arith.mulf %16, %15 : vector<1x2xf32>
    %18 = arith.addf %5, %17 : vector<1x2xf32>
    %19 = vector.extract_strided_slice %1 {offsets = [1, 0, 0], sizes = [1, 16, 16], strides = [1, 1, 1]} : vector<3x16x16xf32> to vector<1x16x16xf32>
    %20 = vector.shape_cast %19 : vector<1x16x16xf32> to vector<16x16xf32>
    %21 = vector.shape_cast %20 : vector<16x16xf32> to vector<1x16x16xf32>
    %cst_6 = arith.constant dense<0.000000e+00> : vector<1xf32>
    %22 = vector.multi_reduction <add>, %21, %cst_6 [1, 2] : vector<1x16x16xf32> to vector<1xf32>
    %23 = vector.shape_cast %22 : vector<1xf32> to vector<1x1x1xf32>
    %24 = vector.extract %23[0, 0, 0] : f32 from vector<1x1x1xf32>
    %25 = vector.broadcast %24 : f32 to vector<1x1xf32>
    %cst_7 = arith.constant 3.906250e-03 : f32
    %26 = vector.broadcast %cst_7 : f32 to vector<1x1xf32>
    %27 = arith.mulf %25, %26 : vector<1x1xf32>
    %28 = vector.extract_strided_slice %4 {offsets = [1, 0], sizes = [1, 2], strides = [1, 1]} : vector<4x2xf32> to vector<1x2xf32>
    %29 = vector.broadcast %27 : vector<1x1xf32> to vector<1x2xf32>
    %30 = arith.mulf %29, %28 : vector<1x2xf32>
    %31 = arith.addf %18, %30 : vector<1x2xf32>
    %32 = vector.extract_strided_slice %1 {offsets = [2, 0, 0], sizes = [1, 16, 16], strides = [1, 1, 1]} : vector<3x16x16xf32> to vector<1x16x16xf32>
    %33 = vector.shape_cast %32 : vector<1x16x16xf32> to vector<16x16xf32>
    %34 = vector.shape_cast %33 : vector<16x16xf32> to vector<1x16x16xf32>
    %cst_8 = arith.constant dense<0.000000e+00> : vector<1xf32>
    %35 = vector.multi_reduction <add>, %34, %cst_8 [1, 2] : vector<1x16x16xf32> to vector<1xf32>
    %36 = vector.shape_cast %35 : vector<1xf32> to vector<1x1x1xf32>
    %37 = vector.extract %36[0, 0, 0] : f32 from vector<1x1x1xf32>
    %38 = vector.broadcast %37 : f32 to vector<1x1xf32>
    %cst_9 = arith.constant 3.906250e-03 : f32
    %39 = vector.broadcast %cst_9 : f32 to vector<1x1xf32>
    %40 = arith.mulf %38, %39 : vector<1x1xf32>
    %41 = vector.extract_strided_slice %4 {offsets = [2, 0], sizes = [1, 2], strides = [1, 1]} : vector<4x2xf32> to vector<1x2xf32>
    %42 = vector.broadcast %40 : vector<1x1xf32> to vector<1x2xf32>
    %43 = arith.mulf %42, %41 : vector<1x2xf32>
    %44 = arith.addf %31, %43 : vector<1x2xf32>
    %c0_10 = arith.constant 0 : index
    %c0_11 = arith.constant 0 : index
    %c0_12 = arith.constant 0 : index
    %45 = vector.load %arg6[%c0_10, %c0_11, %c0_12] : memref<1x1x2xf32, #tpu.memory_space<vmem>>, vector<1x1x2xf32>
    %46 = vector.shape_cast %45 : vector<1x1x2xf32> to vector<1x2xf32>
    %47 = vector.shape_cast %44 : vector<1x2xf32> to vector<1x1x2xf32>
    tpu.vector_store %arg6[%c0_10, %c0_11, %c0_12], %47 {strides = array<i32>} : memref<1x1x2xf32, #tpu.memory_space<vmem>>, vector<1x1x2xf32>,
    %48 = vector.extract_strided_slice %1 {offsets = [0, 0, 0], sizes = [1, 16, 16], strides = [1, 1, 1]} : vector<3x16x16xf32> to vector<1x16x16xf32>
    %49 = vector.shape_cast %48 : vector<1x16x16xf32> to vector<16x16xf32>
    %cst_13 = arith.constant 0.256789058 : f32
    %50 = vector.broadcast %cst_13 : f32 to vector<16x16xf32>
    %51 = arith.mulf %49, %50 : vector<16x16xf32>
    %52 = vector.extract_strided_slice %1 {offsets = [1, 0, 0], sizes = [1, 16, 16], strides = [1, 1, 1]} : vector<3x16x16xf32> to vector<1x16x16xf32>
    %53 = vector.shape_cast %52 : vector<1x16x16xf32> to vector<16x16xf32>
    %cst_14 = arith.constant 0.504128933 : f32
    %54 = vector.broadcast %cst_14 : f32 to vector<16x16xf32>
    %55 = arith.mulf %53, %54 : vector<16x16xf32>
    %56 = arith.addf %51, %55 : vector<16x16xf32>
    %57 = vector.extract_strided_slice %1 {offsets = [2, 0, 0], sizes = [1, 16, 16], strides = [1, 1, 1]} : vector<3x16x16xf32> to vector<1x16x16xf32>
    %58 = vector.shape_cast %57 : vector<1x16x16xf32> to vector<16x16xf32>
    %cst_15 = arith.constant 0.0979062467 : f32
    %59 = vector.broadcast %cst_15 : f32 to vector<16x16xf32>
    %60 = arith.mulf %58, %59 : vector<16x16xf32>
    %61 = arith.addf %56, %60 : vector<16x16xf32>
    %c15_i32 = arith.constant 15 : i32
    %62 = tpu.dynamic_rotate %61 by %c15_i32 dim 0 : vector<16x16xf32>, i32 -> vector<16x16xf32>
    %c15_i32_16 = arith.constant 15 : i32
    %63 = vector.broadcast %c15_i32_16 : i32 to vector<16x16xi32>
    %64 = arith.cmpi slt, %2, %63 : vector<16x16xi32>
    %cst_17 = arith.constant 0.000000e+00 : f32
    %65 = vector.broadcast %cst_17 : f32 to vector<16x16xf32>
    %66 = arith.select %64, %62, %65 : vector<16x16xi1>, vector<16x16xf32>
    %c1_i32 = arith.constant 1 : i32
    %67 = tpu.dynamic_rotate %61 by %c1_i32 dim 0 : vector<16x16xf32>, i32 -> vector<16x16xf32>
    %c1_i32_18 = arith.constant 1 : i32
    %68 = vector.broadcast %c1_i32_18 : i32 to vector<16x16xi32>
    %69 = arith.cmpi sge, %2, %68 : vector<16x16xi32>
    %cst_19 = arith.constant 0.000000e+00 : f32
    %70 = vector.broadcast %cst_19 : f32 to vector<16x16xf32>
    %71 = arith.select %69, %67, %70 : vector<16x16xi1>, vector<16x16xf32>
    %72 = arith.subf %66, %71 : vector<16x16xf32>
    %c15_i32_20 = arith.constant 15 : i32
    %73 = tpu.dynamic_rotate %61 by %c15_i32_20 dim 1 : vector<16x16xf32>, i32 -> vector<16x16xf32>
    %c15_i32_21 = arith.constant 15 : i32
    %74 = vector.broadcast %c15_i32_21 : i32 to vector<16x16xi32>
    %75 = arith.cmpi slt, %3, %74 : vector<16x16xi32>
    %cst_22 = arith.constant 0.000000e+00 : f32
    %76 = vector.broadcast %cst_22 : f32 to vector<16x16xf32>
    %77 = arith.select %75, %73, %76 : vector<16x16xi1>, vector<16x16xf32>
    %c1_i32_23 = arith.constant 1 : i32
    %78 = tpu.dynamic_rotate %61 by %c1_i32_23 dim 1 : vector<16x16xf32>, i32 -> vector<16x16xf32>
    %c1_i32_24 = arith.constant 1 : i32
    %79 = vector.broadcast %c1_i32_24 : i32 to vector<16x16xi32>
    %80 = arith.cmpi sge, %3, %79 : vector<16x16xi32>
    %cst_25 = arith.constant 0.000000e+00 : f32
    %81 = vector.broadcast %cst_25 : f32 to vector<16x16xf32>
    %82 = arith.select %80, %78, %81 : vector<16x16xi1>, vector<16x16xf32>
    %83 = arith.subf %77, %82 : vector<16x16xf32>
    %84 = arith.mulf %72, %72 : vector<16x16xf32>
    %85 = arith.mulf %83, %83 : vector<16x16xf32>
    %86 = arith.addf %84, %85 : vector<16x16xf32>
    %cst_26 = arith.constant 9.99999997E-7 : f32
    %87 = vector.broadcast %cst_26 : f32 to vector<16x16xf32>
    %88 = arith.addf %86, %87 : vector<16x16xf32>
    %89 = math.sqrt %88 : vector<16x16xf32>
    %c3 = arith.constant 3 : index
    %90 = memref.load %arg1[%c3] : memref<4xf32, #tpu.memory_space<smem>>
    %91 = vector.broadcast %90 : f32 to vector<16x16xf32>
    %c0_27 = arith.constant 0 : index
    %92 = memref.load %arg1[%c0_27] : memref<4xf32, #tpu.memory_space<smem>>
    %93 = vector.extract_strided_slice %1 {offsets = [0, 0, 0], sizes = [1, 16, 16], strides = [1, 1, 1]} : vector<3x16x16xf32> to vector<1x16x16xf32>
    %94 = vector.shape_cast %93 : vector<1x16x16xf32> to vector<16x16xf32>
    %95 = vector.broadcast %92 : f32 to vector<16x16xf32>
    %96 = arith.mulf %95, %94 : vector<16x16xf32>
    %97 = arith.addf %91, %96 : vector<16x16xf32>
    %c1 = arith.constant 1 : index
    %98 = memref.load %arg1[%c1] : memref<4xf32, #tpu.memory_space<smem>>
    %99 = vector.extract_strided_slice %1 {offsets = [1, 0, 0], sizes = [1, 16, 16], strides = [1, 1, 1]} : vector<3x16x16xf32> to vector<1x16x16xf32>
    %100 = vector.shape_cast %99 : vector<1x16x16xf32> to vector<16x16xf32>
    %101 = vector.broadcast %98 : f32 to vector<16x16xf32>
    %102 = arith.mulf %101, %100 : vector<16x16xf32>
    %103 = arith.addf %97, %102 : vector<16x16xf32>
    %c2 = arith.constant 2 : index
    %104 = memref.load %arg1[%c2] : memref<4xf32, #tpu.memory_space<smem>>
    %105 = vector.extract_strided_slice %1 {offsets = [2, 0, 0], sizes = [1, 16, 16], strides = [1, 1, 1]} : vector<3x16x16xf32> to vector<1x16x16xf32>
    %106 = vector.shape_cast %105 : vector<1x16x16xf32> to vector<16x16xf32>
    %107 = vector.broadcast %104 : f32 to vector<16x16xf32>
    %108 = arith.mulf %107, %106 : vector<16x16xf32>
    %109 = arith.addf %103, %108 : vector<16x16xf32>
    %c18 = arith.constant 18 : index
    %110 = memref.load %arg2[%c18] : memref<19xf32, #tpu.memory_space<smem>>
    %111 = vector.broadcast %110 : f32 to vector<16x16xf32>
    %c0_28 = arith.constant 0 : index
    %112 = memref.load %arg2[%c0_28] : memref<19xf32, #tpu.memory_space<smem>>
    %c1_i32_29 = arith.constant 1 : i32
    %113 = tpu.dynamic_rotate %89 by %c1_i32_29 dim 0 : vector<16x16xf32>, i32 -> vector<16x16xf32>
    %c1_i32_30 = arith.constant 1 : i32
    %114 = vector.broadcast %c1_i32_30 : i32 to vector<16x16xi32>
    %115 = arith.cmpi sge, %2, %114 : vector<16x16xi32>
    %cst_31 = arith.constant 0.000000e+00 : f32
    %116 = vector.broadcast %cst_31 : f32 to vector<16x16xf32>
    %117 = arith.select %115, %113, %116 : vector<16x16xi1>, vector<16x16xf32>
    %c1_i32_32 = arith.constant 1 : i32
    %118 = tpu.dynamic_rotate %117 by %c1_i32_32 dim 1 : vector<16x16xf32>, i32 -> vector<16x16xf32>
    %c1_i32_33 = arith.constant 1 : i32
    %119 = vector.broadcast %c1_i32_33 : i32 to vector<16x16xi32>
    %120 = arith.cmpi sge, %3, %119 : vector<16x16xi32>
    %cst_34 = arith.constant 0.000000e+00 : f32
    %121 = vector.broadcast %cst_34 : f32 to vector<16x16xf32>
    %122 = arith.select %120, %118, %121 : vector<16x16xi1>, vector<16x16xf32>
    %123 = vector.broadcast %112 : f32 to vector<16x16xf32>
    %124 = arith.mulf %123, %122 : vector<16x16xf32>
    %125 = arith.addf %111, %124 : vector<16x16xf32>
    %c1_35 = arith.constant 1 : index
    %126 = memref.load %arg2[%c1_35] : memref<19xf32, #tpu.memory_space<smem>>
    %c1_i32_36 = arith.constant 1 : i32
    %127 = tpu.dynamic_rotate %89 by %c1_i32_36 dim 0 : vector<16x16xf32>, i32 -> vector<16x16xf32>
    %c1_i32_37 = arith.constant 1 : i32
    %128 = vector.broadcast %c1_i32_37 : i32 to vector<16x16xi32>
    %129 = arith.cmpi sge, %2, %128 : vector<16x16xi32>
    %cst_38 = arith.constant 0.000000e+00 : f32
    %130 = vector.broadcast %cst_38 : f32 to vector<16x16xf32>
    %131 = arith.select %129, %127, %130 : vector<16x16xi1>, vector<16x16xf32>
    %132 = vector.broadcast %126 : f32 to vector<16x16xf32>
    %133 = arith.mulf %132, %131 : vector<16x16xf32>
    %134 = arith.addf %125, %133 : vector<16x16xf32>
    %c2_39 = arith.constant 2 : index
    %135 = memref.load %arg2[%c2_39] : memref<19xf32, #tpu.memory_space<smem>>
    %c1_i32_40 = arith.constant 1 : i32
    %136 = tpu.dynamic_rotate %89 by %c1_i32_40 dim 0 : vector<16x16xf32>, i32 -> vector<16x16xf32>
    %c1_i32_41 = arith.constant 1 : i32
    %137 = vector.broadcast %c1_i32_41 : i32 to vector<16x16xi32>
    %138 = arith.cmpi sge, %2, %137 : vector<16x16xi32>
    %cst_42 = arith.constant 0.000000e+00 : f32
    %139 = vector.broadcast %cst_42 : f32 to vector<16x16xf32>
    %140 = arith.select %138, %136, %139 : vector<16x16xi1>, vector<16x16xf32>
    %c15_i32_43 = arith.constant 15 : i32
    %141 = tpu.dynamic_rotate %140 by %c15_i32_43 dim 1 : vector<16x16xf32>, i32 -> vector<16x16xf32>
    %c15_i32_44 = arith.constant 15 : i32
    %142 = vector.broadcast %c15_i32_44 : i32 to vector<16x16xi32>
    %143 = arith.cmpi slt, %3, %142 : vector<16x16xi32>
    %cst_45 = arith.constant 0.000000e+00 : f32
    %144 = vector.broadcast %cst_45 : f32 to vector<16x16xf32>
    %145 = arith.select %143, %141, %144 : vector<16x16xi1>, vector<16x16xf32>
    %146 = vector.broadcast %135 : f32 to vector<16x16xf32>
    %147 = arith.mulf %146, %145 : vector<16x16xf32>
    %148 = arith.addf %134, %147 : vector<16x16xf32>
    %c3_46 = arith.constant 3 : index
    %149 = memref.load %arg2[%c3_46] : memref<19xf32, #tpu.memory_space<smem>>
    %c1_i32_47 = arith.constant 1 : i32
    %150 = tpu.dynamic_rotate %89 by %c1_i32_47 dim 1 : vector<16x16xf32>, i32 -> vector<16x16xf32>
    %c1_i32_48 = arith.constant 1 : i32
    %151 = vector.broadcast %c1_i32_48 : i32 to vector<16x16xi32>
    %152 = arith.cmpi sge, %3, %151 : vector<16x16xi32>
    %cst_49 = arith.constant 0.000000e+00 : f32
    %153 = vector.broadcast %cst_49 : f32 to vector<16x16xf32>
    %154 = arith.select %152, %150, %153 : vector<16x16xi1>, vector<16x16xf32>
    %155 = vector.broadcast %149 : f32 to vector<16x16xf32>
    %156 = arith.mulf %155, %154 : vector<16x16xf32>
    %157 = arith.addf %148, %156 : vector<16x16xf32>
    %c4 = arith.constant 4 : index
    %158 = memref.load %arg2[%c4] : memref<19xf32, #tpu.memory_space<smem>>
    %159 = vector.broadcast %158 : f32 to vector<16x16xf32>
    %160 = arith.mulf %159, %89 : vector<16x16xf32>
    %161 = arith.addf %157, %160 : vector<16x16xf32>
    %c5 = arith.constant 5 : index
    %162 = memref.load %arg2[%c5] : memref<19xf32, #tpu.memory_space<smem>>
    %c15_i32_50 = arith.constant 15 : i32
    %163 = tpu.dynamic_rotate %89 by %c15_i32_50 dim 1 : vector<16x16xf32>, i32 -> vector<16x16xf32>
    %c15_i32_51 = arith.constant 15 : i32
    %164 = vector.broadcast %c15_i32_51 : i32 to vector<16x16xi32>
    %165 = arith.cmpi slt, %3, %164 : vector<16x16xi32>
    %cst_52 = arith.constant 0.000000e+00 : f32
    %166 = vector.broadcast %cst_52 : f32 to vector<16x16xf32>
    %167 = arith.select %165, %163, %166 : vector<16x16xi1>, vector<16x16xf32>
    %168 = vector.broadcast %162 : f32 to vector<16x16xf32>
    %169 = arith.mulf %168, %167 : vector<16x16xf32>
    %170 = arith.addf %161, %169 : vector<16x16xf32>
    %c6 = arith.constant 6 : index
    %171 = memref.load %arg2[%c6] : memref<19xf32, #tpu.memory_space<smem>>
    %c15_i32_53 = arith.constant 15 : i32
    %172 = tpu.dynamic_rotate %89 by %c15_i32_53 dim 0 : vector<16x16xf32>, i32 -> vector<16x16xf32>
    %c15_i32_54 = arith.constant 15 : i32
    %173 = vector.broadcast %c15_i32_54 : i32 to vector<16x16xi32>
    %174 = arith.cmpi slt, %2, %173 : vector<16x16xi32>
    %cst_55 = arith.constant 0.000000e+00 : f32
    %175 = vector.broadcast %cst_55 : f32 to vector<16x16xf32>
    %176 = arith.select %174, %172, %175 : vector<16x16xi1>, vector<16x16xf32>
    %c1_i32_56 = arith.constant 1 : i32
    %177 = tpu.dynamic_rotate %176 by %c1_i32_56 dim 1 : vector<16x16xf32>, i32 -> vector<16x16xf32>
    %c1_i32_57 = arith.constant 1 : i32
    %178 = vector.broadcast %c1_i32_57 : i32 to vector<16x16xi32>
    %179 = arith.cmpi sge, %3, %178 : vector<16x16xi32>
    %cst_58 = arith.constant 0.000000e+00 : f32
    %180 = vector.broadcast %cst_58 : f32 to vector<16x16xf32>
    %181 = arith.select %179, %177, %180 : vector<16x16xi1>, vector<16x16xf32>
    %182 = vector.broadcast %171 : f32 to vector<16x16xf32>
    %183 = arith.mulf %182, %181 : vector<16x16xf32>
    %184 = arith.addf %170, %183 : vector<16x16xf32>
    %c7 = arith.constant 7 : index
    %185 = memref.load %arg2[%c7] : memref<19xf32, #tpu.memory_space<smem>>
    %c15_i32_59 = arith.constant 15 : i32
    %186 = tpu.dynamic_rotate %89 by %c15_i32_59 dim 0 : vector<16x16xf32>, i32 -> vector<16x16xf32>
    %c15_i32_60 = arith.constant 15 : i32
    %187 = vector.broadcast %c15_i32_60 : i32 to vector<16x16xi32>
    %188 = arith.cmpi slt, %2, %187 : vector<16x16xi32>
    %cst_61 = arith.constant 0.000000e+00 : f32
    %189 = vector.broadcast %cst_61 : f32 to vector<16x16xf32>
    %190 = arith.select %188, %186, %189 : vector<16x16xi1>, vector<16x16xf32>
    %191 = vector.broadcast %185 : f32 to vector<16x16xf32>
    %192 = arith.mulf %191, %190 : vector<16x16xf32>
    %193 = arith.addf %184, %192 : vector<16x16xf32>
    %c8 = arith.constant 8 : index
    %194 = memref.load %arg2[%c8] : memref<19xf32, #tpu.memory_space<smem>>
    %c15_i32_62 = arith.constant 15 : i32
    %195 = tpu.dynamic_rotate %89 by %c15_i32_62 dim 0 : vector<16x16xf32>, i32 -> vector<16x16xf32>
    %c15_i32_63 = arith.constant 15 : i32
    %196 = vector.broadcast %c15_i32_63 : i32 to vector<16x16xi32>
    %197 = arith.cmpi slt, %2, %196 : vector<16x16xi32>
    %cst_64 = arith.constant 0.000000e+00 : f32
    %198 = vector.broadcast %cst_64 : f32 to vector<16x16xf32>
    %199 = arith.select %197, %195, %198 : vector<16x16xi1>, vector<16x16xf32>
    %c15_i32_65 = arith.constant 15 : i32
    %200 = tpu.dynamic_rotate %199 by %c15_i32_65 dim 1 : vector<16x16xf32>, i32 -> vector<16x16xf32>
    %c15_i32_66 = arith.constant 15 : i32
    %201 = vector.broadcast %c15_i32_66 : i32 to vector<16x16xi32>
    %202 = arith.cmpi slt, %3, %201 : vector<16x16xi32>
    %cst_67 = arith.constant 0.000000e+00 : f32
    %203 = vector.broadcast %cst_67 : f32 to vector<16x16xf32>
    %204 = arith.select %202, %200, %203 : vector<16x16xi1>, vector<16x16xf32>
    %205 = vector.broadcast %194 : f32 to vector<16x16xf32>
    %206 = arith.mulf %205, %204 : vector<16x16xf32>
    %207 = arith.addf %193, %206 : vector<16x16xf32>
    %c9 = arith.constant 9 : index
    %208 = memref.load %arg2[%c9] : memref<19xf32, #tpu.memory_space<smem>>
    %c1_i32_68 = arith.constant 1 : i32
    %209 = tpu.dynamic_rotate %109 by %c1_i32_68 dim 0 : vector<16x16xf32>, i32 -> vector<16x16xf32>
    %c1_i32_69 = arith.constant 1 : i32
    %210 = vector.broadcast %c1_i32_69 : i32 to vector<16x16xi32>
    %211 = arith.cmpi sge, %2, %210 : vector<16x16xi32>
    %cst_70 = arith.constant 0.000000e+00 : f32
    %212 = vector.broadcast %cst_70 : f32 to vector<16x16xf32>
    %213 = arith.select %211, %209, %212 : vector<16x16xi1>, vector<16x16xf32>
    %c1_i32_71 = arith.constant 1 : i32
    %214 = tpu.dynamic_rotate %213 by %c1_i32_71 dim 1 : vector<16x16xf32>, i32 -> vector<16x16xf32>
    %c1_i32_72 = arith.constant 1 : i32
    %215 = vector.broadcast %c1_i32_72 : i32 to vector<16x16xi32>
    %216 = arith.cmpi sge, %3, %215 : vector<16x16xi32>
    %cst_73 = arith.constant 0.000000e+00 : f32
    %217 = vector.broadcast %cst_73 : f32 to vector<16x16xf32>
    %218 = arith.select %216, %214, %217 : vector<16x16xi1>, vector<16x16xf32>
    %219 = vector.broadcast %208 : f32 to vector<16x16xf32>
    %220 = arith.mulf %219, %218 : vector<16x16xf32>
    %221 = arith.addf %207, %220 : vector<16x16xf32>
    %c10 = arith.constant 10 : index
    %222 = memref.load %arg2[%c10] : memref<19xf32, #tpu.memory_space<smem>>
    %c1_i32_74 = arith.constant 1 : i32
    %223 = tpu.dynamic_rotate %109 by %c1_i32_74 dim 0 : vector<16x16xf32>, i32 -> vector<16x16xf32>
    %c1_i32_75 = arith.constant 1 : i32
    %224 = vector.broadcast %c1_i32_75 : i32 to vector<16x16xi32>
    %225 = arith.cmpi sge, %2, %224 : vector<16x16xi32>
    %cst_76 = arith.constant 0.000000e+00 : f32
    %226 = vector.broadcast %cst_76 : f32 to vector<16x16xf32>
    %227 = arith.select %225, %223, %226 : vector<16x16xi1>, vector<16x16xf32>
    %228 = vector.broadcast %222 : f32 to vector<16x16xf32>
    %229 = arith.mulf %228, %227 : vector<16x16xf32>
    %230 = arith.addf %221, %229 : vector<16x16xf32>
    %c11 = arith.constant 11 : index
    %231 = memref.load %arg2[%c11] : memref<19xf32, #tpu.memory_space<smem>>
    %c1_i32_77 = arith.constant 1 : i32
    %232 = tpu.dynamic_rotate %109 by %c1_i32_77 dim 0 : vector<16x16xf32>, i32 -> vector<16x16xf32>
    %c1_i32_78 = arith.constant 1 : i32
    %233 = vector.broadcast %c1_i32_78 : i32 to vector<16x16xi32>
    %234 = arith.cmpi sge, %2, %233 : vector<16x16xi32>
    %cst_79 = arith.constant 0.000000e+00 : f32
    %235 = vector.broadcast %cst_79 : f32 to vector<16x16xf32>
    %236 = arith.select %234, %232, %235 : vector<16x16xi1>, vector<16x16xf32>
    %c15_i32_80 = arith.constant 15 : i32
    %237 = tpu.dynamic_rotate %236 by %c15_i32_80 dim 1 : vector<16x16xf32>, i32 -> vector<16x16xf32>
    %c15_i32_81 = arith.constant 15 : i32
    %238 = vector.broadcast %c15_i32_81 : i32 to vector<16x16xi32>
    %239 = arith.cmpi slt, %3, %238 : vector<16x16xi32>
    %cst_82 = arith.constant 0.000000e+00 : f32
    %240 = vector.broadcast %cst_82 : f32 to vector<16x16xf32>
    %241 = arith.select %239, %237, %240 : vector<16x16xi1>, vector<16x16xf32>
    %242 = vector.broadcast %231 : f32 to vector<16x16xf32>
    %243 = arith.mulf %242, %241 : vector<16x16xf32>
    %244 = arith.addf %230, %243 : vector<16x16xf32>
    %c12 = arith.constant 12 : index
    %245 = memref.load %arg2[%c12] : memref<19xf32, #tpu.memory_space<smem>>
    %c1_i32_83 = arith.constant 1 : i32
    %246 = tpu.dynamic_rotate %109 by %c1_i32_83 dim 1 : vector<16x16xf32>, i32 -> vector<16x16xf32>
    %c1_i32_84 = arith.constant 1 : i32
    %247 = vector.broadcast %c1_i32_84 : i32 to vector<16x16xi32>
    %248 = arith.cmpi sge, %3, %247 : vector<16x16xi32>
    %cst_85 = arith.constant 0.000000e+00 : f32
    %249 = vector.broadcast %cst_85 : f32 to vector<16x16xf32>
    %250 = arith.select %248, %246, %249 : vector<16x16xi1>, vector<16x16xf32>
    %251 = vector.broadcast %245 : f32 to vector<16x16xf32>
    %252 = arith.mulf %251, %250 : vector<16x16xf32>
    %253 = arith.addf %244, %252 : vector<16x16xf32>
    %c13 = arith.constant 13 : index
    %254 = memref.load %arg2[%c13] : memref<19xf32, #tpu.memory_space<smem>>
    %255 = vector.broadcast %254 : f32 to vector<16x16xf32>
    %256 = arith.mulf %255, %109 : vector<16x16xf32>
    %257 = arith.addf %253, %256 : vector<16x16xf32>
    %c14 = arith.constant 14 : index
    %258 = memref.load %arg2[%c14] : memref<19xf32, #tpu.memory_space<smem>>
    %c15_i32_86 = arith.constant 15 : i32
    %259 = tpu.dynamic_rotate %109 by %c15_i32_86 dim 1 : vector<16x16xf32>, i32 -> vector<16x16xf32>
    %c15_i32_87 = arith.constant 15 : i32
    %260 = vector.broadcast %c15_i32_87 : i32 to vector<16x16xi32>
    %261 = arith.cmpi slt, %3, %260 : vector<16x16xi32>
    %cst_88 = arith.constant 0.000000e+00 : f32
    %262 = vector.broadcast %cst_88 : f32 to vector<16x16xf32>
    %263 = arith.select %261, %259, %262 : vector<16x16xi1>, vector<16x16xf32>
    %264 = vector.broadcast %258 : f32 to vector<16x16xf32>
    %265 = arith.mulf %264, %263 : vector<16x16xf32>
    %266 = arith.addf %257, %265 : vector<16x16xf32>
    %c15 = arith.constant 15 : index
    %267 = memref.load %arg2[%c15] : memref<19xf32, #tpu.memory_space<smem>>
    %c15_i32_89 = arith.constant 15 : i32
    %268 = tpu.dynamic_rotate %109 by %c15_i32_89 dim 0 : vector<16x16xf32>, i32 -> vector<16x16xf32>
    %c15_i32_90 = arith.constant 15 : i32
    %269 = vector.broadcast %c15_i32_90 : i32 to vector<16x16xi32>
    %270 = arith.cmpi slt, %2, %269 : vector<16x16xi32>
    %cst_91 = arith.constant 0.000000e+00 : f32
    %271 = vector.broadcast %cst_91 : f32 to vector<16x16xf32>
    %272 = arith.select %270, %268, %271 : vector<16x16xi1>, vector<16x16xf32>
    %c1_i32_92 = arith.constant 1 : i32
    %273 = tpu.dynamic_rotate %272 by %c1_i32_92 dim 1 : vector<16x16xf32>, i32 -> vector<16x16xf32>
    %c1_i32_93 = arith.constant 1 : i32
    %274 = vector.broadcast %c1_i32_93 : i32 to vector<16x16xi32>
    %275 = arith.cmpi sge, %3, %274 : vector<16x16xi32>
    %cst_94 = arith.constant 0.000000e+00 : f32
    %276 = vector.broadcast %cst_94 : f32 to vector<16x16xf32>
    %277 = arith.select %275, %273, %276 : vector<16x16xi1>, vector<16x16xf32>
    %278 = vector.broadcast %267 : f32 to vector<16x16xf32>
    %279 = arith.mulf %278, %277 : vector<16x16xf32>
    %280 = arith.addf %266, %279 : vector<16x16xf32>
    %c16 = arith.constant 16 : index
    %281 = memref.load %arg2[%c16] : memref<19xf32, #tpu.memory_space<smem>>
    %c15_i32_95 = arith.constant 15 : i32
    %282 = tpu.dynamic_rotate %109 by %c15_i32_95 dim 0 : vector<16x16xf32>, i32 -> vector<16x16xf32>
    %c15_i32_96 = arith.constant 15 : i32
    %283 = vector.broadcast %c15_i32_96 : i32 to vector<16x16xi32>
    %284 = arith.cmpi slt, %2, %283 : vector<16x16xi32>
    %cst_97 = arith.constant 0.000000e+00 : f32
    %285 = vector.broadcast %cst_97 : f32 to vector<16x16xf32>
    %286 = arith.select %284, %282, %285 : vector<16x16xi1>, vector<16x16xf32>
    %287 = vector.broadcast %281 : f32 to vector<16x16xf32>
    %288 = arith.mulf %287, %286 : vector<16x16xf32>
    %289 = arith.addf %280, %288 : vector<16x16xf32>
    %c17 = arith.constant 17 : index
    %290 = memref.load %arg2[%c17] : memref<19xf32, #tpu.memory_space<smem>>
    %c15_i32_98 = arith.constant 15 : i32
    %291 = tpu.dynamic_rotate %109 by %c15_i32_98 dim 0 : vector<16x16xf32>, i32 -> vector<16x16xf32>
    %c15_i32_99 = arith.constant 15 : i32
    %292 = vector.broadcast %c15_i32_99 : i32 to vector<16x16xi32>
    %293 = arith.cmpi slt, %2, %292 : vector<16x16xi32>
    %cst_100 = arith.constant 0.000000e+00 : f32
    %294 = vector.broadcast %cst_100 : f32 to vector<16x16xf32>
    %295 = arith.select %293, %291, %294 : vector<16x16xi1>, vector<16x16xf32>
    %c15_i32_101 = arith.constant 15 : i32
    %296 = tpu.dynamic_rotate %295 by %c15_i32_101 dim 1 : vector<16x16xf32>, i32 -> vector<16x16xf32>
    %c15_i32_102 = arith.constant 15 : i32
    %297 = vector.broadcast %c15_i32_102 : i32 to vector<16x16xi32>
    %298 = arith.cmpi slt, %3, %297 : vector<16x16xi32>
    %cst_103 = arith.constant 0.000000e+00 : f32
    %299 = vector.broadcast %cst_103 : f32 to vector<16x16xf32>
    %300 = arith.select %298, %296, %299 : vector<16x16xi1>, vector<16x16xf32>
    %301 = vector.broadcast %290 : f32 to vector<16x16xf32>
    %302 = arith.mulf %301, %300 : vector<16x16xf32>
    %303 = arith.addf %289, %302 : vector<16x16xf32>
    %c0_104 = arith.constant 0 : index
    %c0_105 = arith.constant 0 : index
    %c0_106 = arith.constant 0 : index
    %c0_107 = arith.constant 0 : index
    %304 = vector.load %arg5[%c0_104, %c0_105, %c0_106, %c0_107] : memref<1x1x16x16xf32, #tpu.memory_space<vmem>>, vector<1x1x16x16xf32>
    %305 = vector.shape_cast %304 : vector<1x1x16x16xf32> to vector<16x16xf32>
    %306 = vector.shape_cast %303 : vector<16x16xf32> to vector<1x1x16x16xf32>
    tpu.vector_store %arg5[%c0_104, %c0_105, %c0_106, %c0_107], %306 {strides = array<i32>} : memref<1x1x16x16xf32, #tpu.memory_space<vmem>>, vector<1x1x16x16xf32>,
    return
  }
  func.func @transform_0(%arg0: i32) -> i32 {
    %c0_i32 = arith.constant 0 : i32
    %c0_i32_0 = arith.constant 0 : i32
    return %c0_i32 : i32
  }
  func.func @transform_1(%arg0: i32) -> i32 {
    %c0_i32 = arith.constant 0 : i32
    %c0_i32_0 = arith.constant 0 : i32
    return %c0_i32 : i32
  }
  func.func @transform_2(%arg0: i32) -> (i32, i32) {
    %c0_i32 = arith.constant 0 : i32
    %c0_i32_0 = arith.constant 0 : i32
    %c0_i32_1 = arith.constant 0 : i32
    return %c0_i32, %c0_i32_0 : i32, i32
  }
  func.func @transform_3(%arg0: i32) -> (i32, i32, i32, i32) {
    %c0_i32 = arith.constant 0 : i32
    %c0_i32_0 = arith.constant 0 : i32
    %c0_i32_1 = arith.constant 0 : i32
    %c0_i32_2 = arith.constant 0 : i32
    return %arg0, %c0_i32, %c0_i32_0, %c0_i32_1 : i32, i32, i32, i32
  }
  func.func @transform_4(%arg0: i32) -> (i32, i32, i32, i32) {
    %c0_i32 = arith.constant 0 : i32
    %c0_i32_0 = arith.constant 0 : i32
    %c0_i32_1 = arith.constant 0 : i32
    %c0_i32_2 = arith.constant 0 : i32
    return %arg0, %c0_i32, %c0_i32_0, %c0_i32_1 : i32, i32, i32, i32
  }
  func.func @transform_5(%arg0: i32) -> (i32, i32, i32) {
    %c0_i32 = arith.constant 0 : i32
    %c0_i32_0 = arith.constant 0 : i32
    %c0_i32_1 = arith.constant 0 : i32
    return %arg0, %c0_i32, %c0_i32_0 : i32, i32, i32
  }
}

</mosaic_0001>

<bundles_post_ra>
// kernel: mask2mask_forward.1
= control target key start
LH: loop header
LB: loop body
LE: loop exit
PB: predicated region body
PF: predicated region fallthrough
CT: control target
= control target key end

     0   :  { %11 = vsyncpa [#allocation5], 0  ;;  %s1898_s0 = inlined_call_operand.vmem [shape: f32[4], index: 0, kind: input, shape index: {}]   ;;  %s1899_s1 = inlined_call_operand.vmem [shape: f32[19], index: 1, kind: input, shape index: {}]   ;;  %s1900_s2 = inlined_call_operand.vmem [shape: f32[4,2], index: 2, kind: input, shape index: {}]   ;;  %s1901_s3 = inlined_call_operand.hbm [shape: f32[2,3,16,16], index: 3, kind: input, shape index: {}]   ;;  %s1902_s4 = inlined_call_operand.hbm [shape: f32[2,1,16,16], index: 4, kind: output, shape index: {0}]   ;;  %s1903_s5 = inlined_call_operand.hbm [shape: f32[2,1,2], index: 5, kind: output, shape index: {1}]  }
   0x1   :  { %12 = vsyncpa [#allocation7], 0 }
   0x2   :  { %13 = vsyncpa [#allocation3], 0 }
   0x3   :  { %15 = vsyncpa [#allocation3 + $0x1], 0 }
   0x4   :  { %16 = vsyncpa [#allocation4], 0 }
   0x5   :  { %18 = vsyncpa [#allocation4 + $0x1], 0 }
   0x6   :  { %19 = vsyncpa [#allocation11], 0 }
   0x7   :  { %21 = vsyncpa [#allocation11 + $0x1], 0  ;;  %s1269_s18 = smov 0   ;;  %s1271_s19 = smov 0  }
   0x8   :  { %s1273_s20 = smov 0   ;;  %s1275_s21 = smov 0  }
   0x9 LB: > { %s1290_s22 = sadd.s32 4294967295, %s1225_s21   ;;  %s929_s23 = sadd.s32 4294967294, %s1225_s21   ;;  %s1225_s21 = sphi %s1275_s21, %s1929_s21   ;;  %s1221_s20 = sphi %s1273_s20, %s1928_s20   ;;  %s1217_s19 = sphi %s1271_s19, %s1927_s19   ;;  %s1213_s18 = sphi %s1269_s18, %s1926_s18  }
   0xa   : > { %s1294_s24 = sadd.s32 1, %s1225_s21   ;;  %s97_s25 = sadd.s32 1, %s1221_s20 }
   0xb   : > { %s94_s26 = ssub.s32 %s1225_s21, %s1294_s24  ;;  %p104_p0 = scmp.ne.s32.totalorder %s1221_s20, %s1217_s19 }
   0xc   : > { %p95_p1 = scmp.eq.s32.totalorder %s94_s26, 0  ;;  %p105_p2 = scmp.eq.s32.totalorder %s1225_s21, 0 }
   0xd   : > { %p110_p3 = scmp.ne.s32.totalorder %s1217_s19, %s1213_s18  ;;  %p1904_p4 = scmp.eq.s32.totalorder %s1290_s22, 0 }
   0xe   : > { %s1306_s27 = scalar_select %p95_p1, %s1221_s20, %s97_s25  }
   0xf   : > { %p1308_p5 = por %p105_p2, %p104_p0  ;;  %p1314_p6 = por %p1904_p4, %p110_p3 }
  0x10   : > { %p134_p7 = scmp.eq.s32.totalorder %s1290_s22, 1  ;;  %p140_p8 = scmp.eq.s32.totalorder %s929_s23, 1 }
  0x11   : > { %s1910_s29 = scalar_select %p1314_p6, 1, 0 }
  0x12   : > { %p930_p9 = scmp.ge.s32.totalorder %s1225_s21, 1  ;;  %p173_p10 = scmp.lt.s32.totalorder %s1225_s21, 3 }
  0x13   : > { %p1321_p11 = por %p134_p7, %p104_p0  ;;  %p1325_p12 = por %p140_p8, %p110_p3 }
  0x14   : > { %p1329_p13 = pnand %p930_p9, %p173_p10  ;;  %s186_s10 = sshll.u32 %s1898_s0, 4  ;;  %s187_s10 = int_to_ptr.vmem [resolvable:$true] %s186_s10 }
  0x15   : > { %s1911_s30 = scalar_select %p1321_p11, 1, 0 }
  0x16   : > { %s1912_s6 = scalar_select %p1325_p12, 1, 0 }
  0x17   : > { %s1913_s7 = scalar_select %p1329_p13, 1, 0 }
  0x18   : > { %p990_p1 = pneg %p1329_p13  ;;  %p1010_p2 = scmp.lt.s32.totalorder %s1225_s21, 2 }
  0x19   : > { %s197_s14 = sshll.u32 %s1899_s1, 4  ;;  %s1059_s16 = scalar_lea.vmem %s187_s10, 16  ;;  %s198_s14 = int_to_ptr.vmem [resolvable:$true] %s197_s14 }
  0x1a   : > { %p1342_p7 = pnand %p990_p1, %p1904_p4  ;;  %p1351_p3 = pnand %p1010_p2, %p1308_p5 }
  0x1b   : > { %p1060_p8 = scmp.ne.s32.totalorder %s187_s10, %s1059_s16  ;;  %p1067_p0 = scmp.lt.s32.totalorder %s187_s10, %s187_s10 }
  0x1c   : > { %s1915_s15 = scalar_select %p1351_p3, 1, 0 }
  0x1d   : > { %p1061_p9 = pneg %p1342_p7  ;;  %p1068_p4 = scmp.lt.s32.totalorder %s1059_s16, %s1059_s16 }
  0x1f   : > { %p1062_p10 = pnand %p1061_p9, %p1060_p8  ;;  %p1069_p12 = por %p1068_p4, %p1067_p0 }
  0x21   : > { %p1063_p1 = pneg %p1062_p10 }
  0x23   : > { %p1070_p11 = pnand %p1069_p12, %p1063_p1 }
  0x25   : > { %1073 = shalt.err (!%p1070_p11)
}
  0x26   : > { %s1227_s17 = smov [#allocation2]   ;;  %s211_s23 = sand.u32 1, %s1221_s20  }
  0x27   : > { %993 = dma.vmem_to_smem (!%p1342_p7), %s187_s10, 16, %s1227_s17, [#allocation5]  }
  0x28   : > { %s1074_s25 = scalar_lea.vmem %s198_s14, 16  ;;  %p1082_p8 = scmp.lt.s32.totalorder %s198_s14, %s198_s14 }
  0x29   : > { %p1075_p5 = scmp.ne.s32.totalorder %s198_s14, %s1074_s25  ;;  %p1083_p10 = scmp.lt.s32.totalorder %s1074_s25, %s1074_s25 }
  0x2b   : > { %p1077_p2 = pnand %p1075_p5, %p1061_p9  ;;  %p1084_p13 = por %p1083_p10, %p1082_p8 }
  0x2d   : > { %p1078_p6 = pneg %p1077_p2 }
  0x2f   : > { %p1085_p3 = pnand %p1084_p13, %p1078_p6 }
  0x31   : > { %1088 = shalt.err (!%p1085_p3)
}
  0x32   : > { %s1228_s26 = smov [#allocation6]   ;;  %s967_s28 = smul.u32 48, %s211_s23 }
  0x33   : > { %996 = dma.vmem_to_smem (!%p1342_p7), %s198_s14, 16, %s1228_s26, [#allocation7]  }
  0x34   : > { %s968_s8 = smul.u32 768, %s1225_s21  ;;  %s215_s13 = scalar_lea.vmem [#allocation8], %s967_s28 }
  0x35   : > { %s222_s16 = sshll.u32 %s215_s13, 4  ;;  %s1376_s11 = scalar_lea.sflag [#allocation3], %s211_s23  ;;  %s1374_s16 = int_to_ptr.vmem [resolvable:$true] %s222_s16 }
  0x36   : > { %s1372_s12 = scalar_lea.hbm %s1901_s3, %s968_s8  ;;  %p1916_p6 = scmp.ne.s32.totalorder %s1915_s15, 0 }
  0x37   : > { %s1089_s17 = scalar_lea.hbm %s1372_s12, 768  ;;  %s1094_s26 = scalar_lea.hbm %s1901_s3, 1536 }
  0x38   : > { %p1090_p4 = scmp.ne.s32.totalorder %s1372_s12, %s1089_s17  ;;  %p1091_p11 = pneg %p1916_p6 }
  0x39   : > { %p1095_p0 = scmp.lt.u32.totalorder %s1372_s12, %s1901_s3  ;;  %p1096_p7 = scmp.lt.u32.totalorder %s1094_s26, %s1089_s17 }
  0x3a   : > { %p1092_p12 = pnand %p1091_p11, %p1090_p4  ;;  %p1098_p9 = scmp.lt.u32.totalorder %s1089_s17, %s1372_s12 }
  0x3b   : > { %p1097_p3 = por %p1096_p7, %p1095_p0 }
  0x3c   : > { %p1093_p13 = pneg %p1092_p12 }
  0x3d   : > { %p1099_p1 = por %p1098_p9, %p1097_p3 }
  0x3f   : > { %p1100_p5 = pnand %p1099_p1, %p1093_p13 }
  0x41   : > { %1103 = shalt.err (!%p1100_p5)
}
  0x42   : > { %s1104_s23 = scalar_lea.vmem %s1374_s16, 768  ;;  %s1229_s28 = smov [#allocation8]  }
  0x43   : > { %p1105_p2 = scmp.ne.s32.totalorder %s1374_s16, %s1104_s23  ;;  %s1109_s10 = sshll.u32 %s1229_s28, 4  ;;  %s1110_s10 = int_to_ptr.vmem [resolvable:$false] %s1109_s10 }
  0x44   : > { %s1111_s13 = scalar_lea.vmem %s1110_s10, 1536  ;;  %p1112_p4 = scmp.lt.s32.totalorder %s1374_s16, %s1110_s10 }
  0x45   : > { %p1107_p8 = pnand %p1105_p2, %p1091_p11  ;;  %p1113_p12 = scmp.lt.s32.totalorder %s1111_s13, %s1104_s23 }
  0x47   : > { %p1108_p10 = pneg %p1107_p8  ;;  %p1114_p0 = por %p1113_p12, %p1112_p4 }
  0x49   : > { %p1115_p7 = pnand %p1114_p0, %p1108_p10 }
  0x4b   : > { %1118 = shalt.err (!%p1115_p7)
}
  0x4c   : > { %s1230_s17 = smov 128   ;;  %s1231_s14 = smov 8  }
  0x4d   : > { %1000 = dma.hbm_to_vmem [thread:$0]  (!%p1916_p6), %s1372_s12, 768, %s1374_s16, %s1376_s11, %s1230_s17, %s1230_s17, %s1231_s14  }
  0x4e   : > { %p1917_p11 = scmp.ne.s32.totalorder %s1913_s7, 0 }
  0x4f   : > { %p1918_p13 = scmp.eq.s32.totalorder (!%p1917_p11), %s1290_s22, 0 }
  0x50   : > { %234 = sbr.rel (%p1917_p11) target bundleno = 959 (0x3bf), region = 36 }
  0x57   : > { %1192 = dma.done.wait (%p1918_p13), [#allocation5], 16   ;;  %p1919_p3 = pmov %p1918_p13 }
  0x59   : > { %1194 = vsyncadd (%p1919_p3), [#allocation5], 4294967280  ;;  %p1920_p9 = pmov %p1919_p3 }
  0x5a   : > { %p1921_p1 = pmov %p1919_p3 }
  0x5b   : > { %1196 = dma.done.wait (%p1920_p9), [#allocation7], 16  }
  0x5c   : > { %1198 = vsyncadd (%p1921_p1), [#allocation7], 4294967280  ;;  %s1415_s25 = sand.u32 1, %s1217_s19   ;;  %p1922_p6 = scmp.ne.s32.totalorder %s1910_s29, 0 }
  0x5d   : > { %s969_s7 = smul.u32 48, %s1415_s25  ;;  %s245_s15 = scalar_lea.sflag [#allocation3], %s1415_s25 }
  0x5f   : > { %s248_s12 = scalar_lea.vmem [#allocation8], %s969_s7 }
  0x60   : > { %1200 = dma.done.wait (%p1922_p6), %s245_s15, 768  }
  0x61   : > { %1202 = vsyncadd (%p1922_p6), %s245_s15, 4294966528 }
  0x62   : > { %253 = sfence }
  0x63   : > { %v1423_v0 = vld [vmem:[%s248_s12] sm:$0xff]  ;;  %v1425_v1 = vld [vmem:[%s248_s12 + $0x10] sm:$0xff]  ;;  %v1432_v6 = vld [vmem:[%s248_s12 + $0x8] sm:$0xff]  ;;  %s1232_s29 = smov 16   ;;  %vm382_vm0 = vcmask 1047680   ;;  %s441_s16 = sld [smem:[#allocation2]]  ;;  %v286_v36 = vlaneseq }
  0x64   : > { %v1427_v2 = vld [vmem:[%s248_s12 + $0x20] sm:$0xff]  ;;  %v352_v3 = vmul.f32 0.25678906, %v1423_v0  ;;  %v354_v4 = vmul.f32 0.50412893, %v1425_v1  ;;  %v1434_v7 = vld [vmem:[%s248_s12 + $0x18] sm:$0xff] }
  0x65   : > { %v358_v5 = vmul.f32 0.09790625, %v1427_v2  ;;  %v1436_v9 = vld [vmem:[%s248_s12 + $0x28] sm:$0xff]  ;;  %v353_v10 = vmul.f32 0.25678906, %v1432_v6  ;;  %s939_s11 = sld [smem:[#allocation2 + $0x3]] }
  0x66   : > { %v356_v8 = vadd.f32 %v354_v4, %v352_v3  ;;  %v355_v11 = vmul.f32 0.50412893, %v1434_v7  ;;  %v359_v12 = vmul.f32 0.09790625, %v1436_v9  ;;  %s940_s26 = sld [smem:[#allocation2 + $0x1]]  ;;  %s941_s8 = sld [smem:[#allocation2 + $0x2]] }
  0x67   : > { %v1465_v37 = vshrl.u32 %v286_v36, 7  ;;  %s1233_s9 = smov 127   ;;  %s1234_s23 = smov 113   ;;  %v1524_v58 = vand.u32 127, %v286_v36  ;;  %vm292_vm11 = vcmask 130048   ;;  %vm350_vm12 = vcmask 11267  }
  0x68   : > { %v1441_v13 = vadd.f32 %v358_v5, %v356_v8  ;;  %v357_v14 = vadd.f32 %v355_v11, %v353_v10  ;;  %s963_s7 = sshll.u32 %s1290_s22, 4  ;;  %s279_s15 = scalar_lea.vmem [#allocation10], %s1415_s25 }
  0x69   : > { %v442_v20 = vstv %s441_s16  ;;  %vm373_vm1 = vcmp.lt.s32.totalorder %v1465_v37, 1  ;;  %vm376_vm2 = vcmp.ge.s32.totalorder %v1465_v37, 1  ;;  %vm364_vm3 = vcmp.lt.s32.totalorder %v1465_v37, 7  ;;  %s809_s12 = sshll.u32 %s279_s15, 4  ;;  %p1923_p2 = scmp.ne.s32.totalorder %s1911_s30, 0  ;;  %s1700_s12 = int_to_ptr.vmem [resolvable:$true] %s809_s12 }
  0x6a   : > { %383 = vrot.lane.b32.xlu0 %v1441_v13, %s1232_s29  ;;  %v1445_v15 = vadd.f32 %v359_v12, %v357_v14  ;;  %v443_v21 = vmul.f32 %v442_v20, %v1423_v0  ;;  %v444_v22 = vmul.f32 %v442_v20, %v1432_v6  ;;  %v1495_v49 = vadd.s32 8, %v1465_v37 }
  0x6b   : > { %v440_v23 = vstv %s939_s11  ;;  %v371_v54 = vrot.slane %v1441_v13, 7  ;;  %v362_v56 = vrot.slane %v1441_v13, 1  ;;  %vm395_vm5 = vcmp.lt.s32.totalorder %v1524_v58, 15  ;;  %s1698_s11 = scalar_lea.hbm %s1903_s5, %s963_s7 }
  0x6c   : > { %v448_v24 = vstv %s940_s26  ;;  %v445_v25 = vadd.f32 %v443_v21, %v440_v23  ;;  %v446_v27 = vadd.f32 %v444_v22, %v440_v23  ;;  %v454_v29 = vstv %s941_s8  ;;  %s781_s26 = scalar_lea.sflag [#allocation11], %s1415_s25  ;;  %s1119_s8 = scalar_lea.vmem %s1700_s12, 16 }
  0x6d   : > { %v449_v26 = vmul.f32 %v448_v24, %v1425_v1  ;;  %v450_v28 = vmul.f32 %v448_v24, %v1434_v7  ;;  %v455_v31 = vmul.f32 %v454_v29, %v1427_v2  ;;  %v456_v33 = vmul.f32 %v454_v29, %v1436_v9  ;;  %p1120_p5 = scmp.ne.s32.totalorder %s1700_s12, %s1119_s8 }
  0x6e   : > { %386 = vrot.lane.b32.xlu0 %v1445_v15, %s1232_s29  ;;  %vm368_vm4 = vcmp.lt.s32.totalorder %v1495_v49, 15  ;;  %v372_v53 = vrot.slane %v1445_v15, 7  ;;  %v363_v55 = vrot.slane %v1445_v15, 1  ;;  %vm406_vm6 = vcmp.ge.s32.totalorder %v1524_v58, 1 }
  0x6f   : > { %v451_v30 = vadd.f32 %v449_v26, %v445_v25  ;;  %v452_v32 = vadd.f32 %v450_v28, %v446_v27  ;;  %p1121_p8 = pnand %p1120_p5, %p1923_p2 }
  0x70   : > { %v375_v57 = vsel %vm373_vm1, %v372_v53, %v371_v54  ;;  %v365_v59 = vsel %vm364_vm3, %v362_v56, %v363_v55  ;;  %v366_v62 = vsel %vm364_vm3, %v363_v55, %v362_v56  ;;  %v374_v4 = vsel %vm373_vm1, %v371_v54, %v372_v53 }
  0x71   : > { %v1461_v34 = vadd.f32 %v455_v31, %v451_v30  ;;  %v1463_v35 = vadd.f32 %v456_v33, %v452_v32  ;;  %v378_v60 = vsel %vm376_vm2, %v375_v57, 0.0  ;;  %v370_v3 = vsel %vm368_vm4, %v366_v62, 0.0  ;;  %p1122_p10 = pneg %p1121_p8 }
  0x72   : > { %v380_v63 = vsub.f32 %v365_v59, %v378_v60  ;;  %v381_v14 = vsub.f32 %v370_v3, %v374_v4  ;;  %v293_v54 = vsel %vm292_vm11, %v1423_v0, 0.0  ;;  %v294_v55 = vsel %vm292_vm11, %v1432_v6, 0.0 }
  0x73   : > { %v618_v40 = vrot.slane %v1461_v34, 7  ;;  %v619_v41 = vrot.slane %v1463_v35, 7  ;;  %v720_v47 = vrot.slane %v1461_v34, 1  ;;  %v721_v48 = vrot.slane %v1463_v35, 1 }
  0x74   : > { %v418_v21 = vmul.f32 %v381_v14, %v381_v14  ;;  %v295_v37 = vadd.f32 %v294_v55, %v293_v54  ;;  %v312_v14 = vsel %vm292_vm11, %v1425_v1, 0.0 }
  0x75   : > { %v621_v43 = vsel %vm373_vm1, %v619_v41, %v618_v40  ;;  %v1489_v46 = vsel %vm373_vm1, %v618_v40, %v619_v41  ;;  %v1503_v50 = vsel %vm364_vm3, %v720_v47, %v721_v48  ;;  %v723_v51 = vsel %vm364_vm3, %v721_v48, %v720_v47 }
  0x76   : > { %v1482_v45 = vsel %vm376_vm2, %v621_v43, 0.0  ;;  %v1514_v52 = vsel %vm368_vm4, %v723_v51, 0.0 }
  0xdc   : > { %v384_v16 = vpop.permute.xlu0 %383 }
  0xdd   : > { %v385_v17 = vsel %vm382_vm0, %v384_v16, %v1441_v13 }
  0xde   : > { %389 = vrot.lane.b32.xlu1 %v385_v17, %s1232_s29 }
  0xe0   : > { %v387_v18 = vpop.permute.xlu0 %386 }
  0xe1   : > { %v388_v19 = vsel %vm382_vm0, %v387_v18, %v1445_v15 }
  0xe2   : > { %391 = vrot.lane.b32.xlu1 %v388_v19, %s1232_s29 }
 0x150   : > { %v390_v38 = vpop.permute.xlu1 %389 }
 0x151   : > { %v393_v39 = vsel %vm382_vm0, %v390_v38, %v1441_v13  ;;  %v417_v13 = vmul.f32 %v380_v63, %v380_v63 }
 0x152   : > { %398 = vrot.lane.b32.xlu0 %v393_v39, %s1233_s9 }
 0x154   : > { %v392_v42 = vpop.permute.xlu1 %391 }
 0x155   : > { %v394_v44 = vsel %vm382_vm0, %v392_v42, %v1445_v15 }
 0x156   : > { %407 = vrot.lane.b32.xlu0 %v393_v39, %s1234_s23  ;;  %400 = vrot.lane.b32.xlu1 %v394_v44, %s1233_s9 }
 0x15a   : > { %409 = vrot.lane.b32.xlu1 %v394_v44, %s1234_s23  ;;  %624 = vrot.lane.b32.xlu0 %v1482_v45, %s1232_s29 }
 0x15e   : > { %672 = vrot.lane.b32.xlu0 %v1461_v34, %s1232_s29  ;;  %627 = vrot.lane.b32.xlu1 %v1489_v46, %s1232_s29 }
 0x162   : > { %726 = vrot.lane.b32.xlu0 %v1503_v50, %s1232_s29  ;;  %675 = vrot.lane.b32.xlu1 %v1463_v35, %s1232_s29 }
 0x166   : > { %729 = vrot.lane.b32.xlu1 %v1514_v52, %s1232_s29 }
 0x1c4   : > { %v399_v61 = vpop.permute.xlu0 %398 }
 0x1c5   : > { %v404_v10 = vsel %vm395_vm5, %v399_v61, 0.0 }
 0x1c8   : > { %v401_v5 = vpop.permute.xlu1 %400  ;;  %v408_v8 = vpop.permute.xlu0 %407 }
 0x1c9   : > { %v413_v11 = vsel %vm406_vm6, %v408_v8, 0.0  ;;  %v405_v17 = vsel %vm395_vm5, %v401_v5, 0.0 }
 0x1ca   : > { %v415_v12 = vsub.f32 %v404_v10, %v413_v11 }
 0x1cc   : > { %v419_v15 = vmul.f32 %v415_v12, %v415_v12  ;;  %v410_v16 = vpop.permute.xlu1 %409  ;;  %v625_v56 = vpop.permute.xlu0 %624  ;;  %v331_v12 = vsel %vm292_vm11, %v1427_v2, 0.0 }
 0x1cd   : > { %v414_v18 = vsel %vm406_vm6, %v410_v16, 0.0 }
 0x1ce   : > { %v421_v19 = vadd.f32 %v419_v15, %v417_v13  ;;  %v416_v20 = vsub.f32 %v405_v17, %v414_v18  ;;  %v332_v13 = vsel %vm292_vm11, %v1436_v9, 0.0  ;;  %v313_v15 = vsel %vm292_vm11, %v1434_v7, 0.0 }
 0x1cf   : > { %v333_v16 = vadd.f32 %v332_v13, %v331_v12  ;;  %v314_v17 = vadd.f32 %v313_v15, %v312_v14  ;;  %v626_v18 = vsel %vm382_vm0, %v625_v56, %v1482_v45 }
 0x1d0   : > { %v423_v22 = vadd.f32 1e-06, %v421_v19  ;;  %v420_v23 = vmul.f32 %v416_v20, %v416_v20  ;;  %v628_v57 = vpop.permute.xlu1 %627  ;;  %v673_v59 = vpop.permute.xlu0 %672 }
 0x1d1   : > { %v629_v1 = vsel %vm382_vm0, %v628_v57, %v1489_v46 }
 0x1d2   : > { %1055 = vrsqrt.f32 %v423_v22  ;;  %v422_v24 = vadd.f32 %v420_v23, %v418_v21  ;;  %vm427_vm7 = vcmp.eq.f32.partialorder %v423_v22, inf  ;;  %v430_v28 = vand.u32 2147483648, %v423_v22 }
 0x1d3   : > { %vm429_vm8 = vcmp.eq.f32.partialorder %v423_v22, 0.0  ;;  %v674_v21 = vsel %vm382_vm0, %v673_v59, %v1461_v34 }
 0x1d4   : > { %v424_v25 = vadd.f32 1e-06, %v422_v24  ;;  %v676_v60 = vpop.permute.xlu1 %675  ;;  %v727_v61 = vpop.permute.xlu0 %726 }
 0x1d5   : > { %v677_v24 = vsel %vm382_vm0, %v676_v60, %v1463_v35 }
 0x1d6   : > { %1057 = vrsqrt.f32 %v424_v25  ;;  %vm434_vm9 = vcmp.eq.f32.partialorder %v424_v25, inf  ;;  %v437_v33 = vand.u32 2147483648, %v424_v25  ;;  %vm436_vm10 = vcmp.eq.f32.partialorder %v424_v25, 0.0 }
 0x1d8   : > { %v730_v49 = vpop.permute.xlu1 %729 }
 0x1dc   : > { %v1056_v26 = vpop.eup %1055 }
 0x1dd   : > { %v426_v27 = vmul.f32 %v1056_v26, %v423_v22 }
 0x1df   : > { %v428_v29 = vsel %vm427_vm7, %v423_v22, %v426_v27  ;;  %v728_v27 = vsel %vm382_vm0, %v727_v61, %v1503_v50 }
 0x1e0   : > { %v1058_v30 = vpop.eup %1057  ;;  %v1546_v31 = vsel %vm429_vm8, %v430_v28, %v428_v29  ;;  %v731_v28 = vsel %vm382_vm0, %v730_v49, %v1514_v52 }
 0x1e1   : > { %516 = vrot.lane.b32.xlu0 %v1546_v31, %s1232_s29  ;;  %v433_v32 = vmul.f32 %v1058_v30, %v424_v25  ;;  %v564_v39 = vrot.slane %v1546_v31, 1  ;;  %v462_v41 = vrot.slane %v1546_v31, 7 }
 0x1e3   : > { %v435_v36 = vsel %vm434_vm9, %v424_v25, %v433_v32 }
 0x1e4   : > { %v1550_v38 = vsel %vm436_vm10, %v437_v33, %v435_v36 }
 0x1e5   : > { %519 = vrot.lane.b32.xlu1 %v1550_v38, %s1232_s29  ;;  %v565_v40 = vrot.slane %v1550_v38, 1  ;;  %v463_v42 = vrot.slane %v1550_v38, 7 }
 0x1e7   : > { %v1560_v43 = vsel %vm364_vm3, %v564_v39, %v565_v40  ;;  %v1564_v44 = vsel %vm373_vm1, %v462_v41, %v463_v42  ;;  %v465_v47 = vsel %vm373_vm1, %v463_v42, %v462_v41  ;;  %v567_v48 = vsel %vm364_vm3, %v565_v40, %v564_v39 }
 0x1e8   : > { %570 = vrot.lane.b32.xlu0 %v1560_v43, %s1232_s29  ;;  %v1576_v51 = vsel %vm376_vm2, %v465_v47, 0.0  ;;  %v1582_v53 = vsel %vm368_vm4, %v567_v48, 0.0 }
 0x1e9   : > { %471 = vrot.lane.b32.xlu1 %v1564_v44, %s1232_s29 }
 0x1ec   : > { %468 = vrot.lane.b32.xlu0 %v1576_v51, %s1232_s29 }
 0x1ed   : > { %573 = vrot.lane.b32.xlu1 %v1582_v53, %s1232_s29 }
 0x20b   : > { %296 = vadd.xlane.f32.xlu0 %v295_v37 }
 0x253   : > { %v517_v62 = vpop.permute.xlu0 %516 }
 0x254   : > { %v518_v63 = vsel %vm382_vm0, %v517_v62, %v1546_v31 }
 0x255   : > { %522 = vrot.lane.b32.xlu0 %v518_v63, %s1232_s29 }
 0x257   : > { %v520_v3 = vpop.permute.xlu1 %519 }
 0x258   : > { %v521_v0 = vsel %vm382_vm0, %v520_v3, %v1550_v38 }
 0x259   : > { %524 = vrot.lane.b32.xlu1 %v521_v0, %s1232_s29 }
 0x25a   : > { %v571_v6 = vpop.permute.xlu0 %570 }
 0x25b   : > { %v472_v4 = vpop.permute.xlu1 %471  ;;  %v572_v5 = vsel %vm382_vm0, %v571_v6, %v1560_v43 }
 0x25c   : > { %576 = vrot.lane.b32.xlu0 %v572_v5, %s1232_s29  ;;  %v473_v8 = vsel %vm382_vm0, %v472_v4, %v1564_v44 }
 0x25d   : > { %476 = vrot.lane.b32.xlu1 %v473_v8, %s1232_s29 }
 0x25e   : > { %v469_v10 = vpop.permute.xlu0 %468 }
 0x25f   : > { %v470_v11 = vsel %vm382_vm0, %v469_v10, %v1576_v51  ;;  %v574_v19 = vpop.permute.xlu1 %573 }
 0x260   : > { %474 = vrot.lane.b32.xlu0 %v470_v11, %s1232_s29  ;;  %v575_v2 = vsel %vm382_vm0, %v574_v19, %v1582_v53 }
 0x27f   : > { %334 = vadd.xlane.f32.xlu0 %v333_v16 }
 0x281   : > { %315 = vadd.xlane.f32.xlu1 %v314_v17 }
 0x292   : > { %630 = vrot.lane.b32.xlu1 %v626_v18, %s1232_s29 }
 0x296   : > { %578 = vrot.lane.b32.xlu1 %v575_v2, %s1232_s29 }
 0x298   : > { %v297_v9 = vpop.xlane.xlu0 %296 }
 0x299   : > { %v298_v7 = vrot.slane %v297_v9, 4 }
 0x29a   : > { %632 = vrot.lane.b32.xlu1 %v629_v1, %s1232_s29 }
 0x29b   : > { %v299_v20 = vadd.f32 %v298_v7, %v297_v9  ;;  %v291_v7 = vld [vmem:[%s1900_s2] sm:$0xf] }
 0x29d   : > { %v300_v22 = vrot.slane %v299_v20, 2 }
 0x29e   : > { %678 = vrot.lane.b32.xlu1 %v674_v21, %s1232_s29 }
 0x29f   : > { %v301_v23 = vadd.f32 %v300_v22, %v299_v20 }
 0x2a1   : > { %v302_v25 = vrot.slane %v301_v23, 1 }
 0x2a2   : > { %680 = vrot.lane.b32.xlu1 %v677_v24, %s1232_s29 }
 0x2a3   : > { %v303_v26 = vadd.f32 %v302_v25, %v301_v23 }
 0x2a5   : > { %970 = vpush %v303_v26 }
 0x2a6   : > { %732 = vrot.lane.b32.xlu1 %v728_v27, %s1232_s29 }
 0x2aa   : > { %734 = vrot.lane.b32.xlu1 %v731_v28, %s1232_s29 }
 0x2c7   : > { %v523_v29 = vpop.permute.xlu0 %522 }
 0x2c8   : > { %v526_v30 = vsel %vm382_vm0, %v523_v29, %v1546_v31 }
 0x2c9   : > { %530 = vrot.lane.b32.xlu1 %v526_v30, %s1234_s23 }
 0x2cb   : > { %v525_v32 = vpop.permute.xlu1 %524 }
 0x2cc   : > { %v527_v33 = vsel %vm382_vm0, %v525_v32, %v1550_v38 }
 0x2cd   : > { %532 = vrot.lane.b32.xlu1 %v527_v33, %s1234_s23 }
 0x2ce   : > { %v577_v36 = vpop.permute.xlu0 %576 }
 0x2cf   : > { %v477_v39 = vpop.permute.xlu1 %476  ;;  %v580_v47 = vsel %vm382_vm0, %v577_v36, %v1560_v43 }
 0x2d0   : > { %v479_v42 = vsel %vm382_vm0, %v477_v39, %v1564_v44 }
 0x2d1   : > { %550 = vrot.lane.b32.xlu1 %v526_v30, %s1233_s9 }
 0x2d2   : > { %v475_v40 = vpop.permute.xlu0 %474 }
 0x2d3   : > { %v478_v41 = vsel %vm382_vm0, %v475_v40, %v1576_v51 }
 0x2d4   : > { %502 = vrot.lane.b32.xlu0 %v478_v41, %s1233_s9 }
 0x2d5   : > { %484 = vrot.lane.b32.xlu1 %v479_v42, %s1234_s23 }
 0x2d6   : > { %s971_s28 = spop %970 }
 0x2d7   : > { %v305_v9 = vstv %s971_s28 }
 0x2d8   : > { %v306_v1 = vmul.f32 0.00390625, %v305_v9 }
 0x2d9   : > { %504 = vrot.lane.b32.xlu1 %v479_v42, %s1233_s9 }
 0x2da   : > { %v307_v21 = vmul.f32 %v306_v1, %v291_v7 }
 0x2dc   : > { %v309_v23 = vrot.slane %v307_v21, 5 }
 0x2dd   : > { %482 = vrot.lane.b32.xlu1 %v478_v41, %s1234_s23 }
 0x2de   : > { %v311_v30 = vadd.f32 %v309_v23, %v291_v7 }
 0x2e1   : > { %552 = vrot.lane.b32.xlu1 %v527_v33, %s1233_s9 }
 0x2e5   : > { %584 = vrot.lane.b32.xlu1 %v580_v47, %s1234_s23 }
 0x2e9   : > { %604 = vrot.lane.b32.xlu1 %v580_v47, %s1233_s9 }
 0x30c   : > { %v335_v48 = vpop.xlane.xlu0 %334 }
 0x30d   : > { %v336_v54 = vrot.slane %v335_v48, 4 }
 0x30e   : > { %v316_v55 = vpop.xlane.xlu1 %315 }
 0x30f   : > { %v317_v37 = vrot.slane %v316_v55, 4  ;;  %v337_v56 = vadd.f32 %v336_v54, %v335_v48 }
 0x311   : > { %v318_v57 = vadd.f32 %v317_v37, %v316_v55  ;;  %v338_v59 = vrot.slane %v337_v56, 2 }
 0x312   : > { %v631_v60 = vpop.permute.xlu1 %630 }
 0x313   : > { %v319_v61 = vrot.slane %v318_v57, 2  ;;  %v634_v49 = vsel %vm382_vm0, %v631_v60, %v1482_v45  ;;  %v339_v62 = vadd.f32 %v338_v59, %v337_v56 }
 0x314   : > { %638 = vrot.lane.b32.xlu1 %v634_v49, %s1234_s23 }
 0x315   : > { %v320_v63 = vadd.f32 %v319_v61, %v318_v57  ;;  %v340_v3 = vrot.slane %v339_v62, 1 }
 0x316   : > { %v579_v0 = vpop.permute.xlu1 %578 }
 0x317   : > { %v321_v6 = vrot.slane %v320_v63, 1  ;;  %v341_v4 = vadd.f32 %v340_v3, %v339_v62  ;;  %v581_v12 = vsel %vm382_vm0, %v579_v0, %v1582_v53 }
 0x318   : > { %658 = vrot.lane.b32.xlu1 %v634_v49, %s1233_s9 }
 0x319   : > { %v322_v5 = vadd.f32 %v321_v6, %v320_v63 }
 0x31a   : > { %v633_v8 = vpop.permute.xlu1 %632 }
 0x31b   : > { %972 = vpush %v322_v5  ;;  %v635_v10 = vsel %vm382_vm0, %v633_v8, %v1489_v46 }
 0x31c   : > { %640 = vrot.lane.b32.xlu0 %v635_v10, %s1234_s23  ;;  %974 = vpush %v341_v4 }
 0x31e   : > { %v679_v11 = vpop.permute.xlu1 %678 }
 0x31f   : > { %v682_v13 = vsel %vm382_vm0, %v679_v11, %v1461_v34 }
 0x320   : > { %586 = vrot.lane.b32.xlu0 %v581_v12, %s1234_s23  ;;  %686 = vrot.lane.b32.xlu1 %v682_v13, %s1234_s23 }
 0x322   : > { %v681_v14 = vpop.permute.xlu1 %680 }
 0x323   : > { %v683_v17 = vsel %vm382_vm0, %v681_v14, %v1463_v35 }
 0x324   : > { %606 = vrot.lane.b32.xlu0 %v581_v12, %s1233_s9  ;;  %706 = vrot.lane.b32.xlu1 %v682_v13, %s1233_s9 }
 0x326   : > { %v733_v15 = vpop.permute.xlu1 %732 }
 0x327   : > { %v736_v16 = vsel %vm382_vm0, %v733_v15, %v1503_v50 }
 0x328   : > { %660 = vrot.lane.b32.xlu0 %v635_v10, %s1233_s9  ;;  %740 = vrot.lane.b32.xlu1 %v736_v16, %s1234_s23 }
 0x32a   : > { %v735_v18 = vpop.permute.xlu1 %734 }
 0x32b   : > { %v737_v19 = vsel %vm382_vm0, %v735_v18, %v1514_v52 }
 0x32c   : > { %688 = vrot.lane.b32.xlu0 %v683_v17, %s1234_s23  ;;  %760 = vrot.lane.b32.xlu1 %v736_v16, %s1233_s9 }
 0x330   : > { %708 = vrot.lane.b32.xlu0 %v683_v17, %s1233_s9 }
 0x334   : > { %742 = vrot.lane.b32.xlu0 %v737_v19, %s1234_s23 }
 0x338   : > { %762 = vrot.lane.b32.xlu0 %v737_v19, %s1233_s9  ;;  %s1235_s9 = smov [#allocation10]  }
 0x339   : > { %s1123_s23 = sshll.u32 %s1235_s9, 4  ;;  %s1124_s23 = int_to_ptr.vmem [resolvable:$false] %s1123_s23 }
 0x33a   : > { %s1125_s28 = scalar_lea.vmem %s1124_s23, 32  ;;  %p1126_p4 = scmp.lt.s32.totalorder %s1700_s12, %s1124_s23 }
 0x33b   : > { %v1682_v2 = vpop.permute.xlu1 %530  ;;  %p1127_p12 = scmp.lt.s32.totalorder %s1125_s28, %s1119_s8 }
 0x33d   : > { %p1128_p0 = por %p1127_p12, %p1126_p4 }
 0x33f   : > { %v1687_v20 = vpop.permute.xlu1 %532  ;;  %p1129_p7 = pnand %p1128_p0, %p1122_p10 }
 0x343   : > { %v1689_v24 = vpop.permute.xlu1 %550 }
 0x347   : > { %v1693_v36 = vpop.permute.xlu1 %484 }
 0x34c   : > { %s973_s17 = spop %972 }
 0x34d   : > { %v324_v22 = vstv %s973_s17  ;;  %s975_s14 = spop %974 }
 0x34e   : > { %v325_v25 = vmul.f32 0.00390625, %v324_v22  ;;  %v343_v26 = vstv %s975_s14 }
 0x34f   : > { %v344_v27 = vmul.f32 0.00390625, %v343_v26 }
 0x350   : > { %v326_v28 = vmul.f32 %v325_v25, %v291_v7 }
 0x351   : > { %v345_v29 = vmul.f32 %v344_v27, %v291_v7 }
 0x352   : > { %v328_v32 = vrot.slane %v326_v28, 6 }
 0x353   : > { %v347_v33 = vrot.slane %v345_v29, 7 }
 0x354   : > { %v330_v39 = vadd.f32 %v328_v32, %v311_v30 }
 0x356   : > { %v349_v40 = vadd.f32 %v347_v33, %v330_v39 }
 0x358   : > { %351 = vst.msk [vmem:[%s279_s15 - $0x3] sm:$0x8] %vm350_vm12, %v349_v40 }
 0x359   : > { %1132 = shalt.err (!%p1129_p7)
}
 0x35a   : > { %s1133_s10 = scalar_lea.hbm %s1698_s11, 16  ;;  %s1137_s14 = scalar_lea.hbm %s1903_s5, 32 }
 0x35b   : > { %p1134_p11 = scmp.ne.s32.totalorder %s1698_s11, %s1133_s10  ;;  %p1138_p9 = scmp.lt.u32.totalorder %s1698_s11, %s1903_s5 }
 0x35c   : > { %p1139_p1 = scmp.lt.u32.totalorder %s1137_s14, %s1133_s10  ;;  %p1141_p5 = scmp.lt.u32.totalorder %s1133_s10, %s1698_s11 }
 0x35d   : > { %p1135_p13 = pnand %p1134_p11, %p1923_p2 }
 0x35e   : > { %p1140_p6 = por %p1139_p1, %p1138_p9 }
 0x35f   : > { %p1136_p3 = pneg %p1135_p13 }
 0x360   : > { %p1142_p8 = por %p1141_p5, %p1140_p6 }
 0x362   : > { %p1143_p10 = pnand %p1142_p8, %p1136_p3 }
 0x364   : > { %1146 = shalt.err (!%p1143_p10)
}
 0x365   : > { %987 = dma.vmem_to_hbm [thread:$0]  (%p1923_p2), %s1700_s12, 16, %s1698_s11, %s781_s26   ;;  %v505_v41 = vpop.permute.xlu1 %504  ;;  %v503_v56 = vpop.permute.xlu0 %502  ;;  %v536_v3 = vsel %vm406_vm6, %v1682_v2, 0.0  ;;  %v556_v11 = vsel %vm395_vm5, %v1689_v24, 0.0  ;;  %v489_v14 = vsel %vm406_vm6, %v1693_v36, 0.0 }
 0x366   : > { %s1724_s29 = sld [smem:[#allocation6]]  ;;  %s1726_s16 = sld [smem:[#allocation6 + $0x12]]  ;;  %v508_v61 = vsel %vm395_vm5, %v503_v56, 0.0  ;;  %v509_v21 = vsel %vm395_vm5, %v505_v41, 0.0 }
 0x367   : > { %s1728_s8 = sld [smem:[#allocation6 + $0x1]]  ;;  %s1732_s9 = sld [smem:[#allocation6 + $0x2]] }
 0x368   : > { %s1735_s12 = sld [smem:[#allocation6 + $0x3]]  ;;  %s1743_s11 = sld [smem:[#allocation6 + $0x4]] }
 0x369   : > { %v483_v42 = vpop.permute.xlu1 %482  ;;  %s1749_s26 = sld [smem:[#allocation6 + $0x5]]  ;;  %s1752_s23 = sld [smem:[#allocation6 + $0x6]] }
 0x36a   : > { %v488_v47 = vsel %vm406_vm6, %v483_v42, 0.0  ;;  %s1759_s28 = sld [smem:[#allocation6 + $0x7]]  ;;  %s1767_s10 = sld [smem:[#allocation6 + $0x8]] }
 0x36b   : > { %s1769_s13 = sld [smem:[#allocation6 + $0x9]]  ;;  %s1772_s17 = sld [smem:[#allocation6 + $0xa]] }
 0x36c   : > { %v490_v48 = vstv %s1724_s29  ;;  %v460_v55 = vstv %s1726_s16  ;;  %s1782_s14 = sld [smem:[#allocation6 + $0xb]]  ;;  %s1786_s7 = sld [smem:[#allocation6 + $0xd]] }
 0x36d   : > { %v491_v54 = vmul.f32 %v490_v48, %v488_v47  ;;  %v496_v37 = vstv %s1728_s8  ;;  %v510_v60 = vstv %s1732_s9  ;;  %s1792_s15 = sld [smem:[#allocation6 + $0xc]]  ;;  %s1800_s29 = sld [smem:[#allocation6 + $0xe]] }
 0x36e   : > { %v497_v59 = vmul.f32 %v496_v37, %v1576_v51  ;;  %v511_v62 = vmul.f32 %v510_v60, %v508_v61  ;;  %v538_v63 = vstv %s1735_s12  ;;  %v553_v51 = vpop.permute.xlu1 %552  ;;  %v544_v4 = vstv %s1743_s11  ;;  %s1805_s16 = sld [smem:[#allocation6 + $0xf]]  ;;  %s1807_s8 = sld [smem:[#allocation6 + $0x10]] }
 0x36f   : > { %v493_v57 = vadd.f32 %v491_v54, %v460_v55  ;;  %v539_v6 = vmul.f32 %v538_v63, %v536_v3  ;;  %v545_v8 = vmul.f32 %v544_v4, %v1546_v31  ;;  %v558_v10 = vstv %s1749_s26  ;;  %s1815_s9 = sld [smem:[#allocation6 + $0x11]]  ;;  %s938_s12 = sshll.u32 %s1415_s25, 4 }
 0x370   : > { %v559_v15 = vmul.f32 %v558_v10, %v556_v11  ;;  %v592_v16 = vstv %s1752_s23  ;;  %v492_v31 = vmul.f32 %v490_v48, %v489_v14  ;;  %v598_v2 = vstv %s1759_s28  ;;  %s273_s11 = scalar_lea.vmem [#allocation9], %s938_s12  ;;  %s966_s26 = sshll.u32 %s1290_s22, 8 }
 0x371   : > { %v499_v49 = vadd.f32 %v497_v59, %v493_v57  ;;  %v498_v22 = vmul.f32 %v496_v37, %v1564_v44  ;;  %v599_v23 = vmul.f32 %v598_v2, %v1560_v43  ;;  %v612_v24 = vstv %s1767_s10  ;;  %s793_s23 = sshll.u32 %s273_s11, 4  ;;  %s776_s22 = scalar_lea.sflag [#allocation4], %s1415_s25  ;;  %s1853_s23 = int_to_ptr.vmem [resolvable:$true] %s793_s23 }
 0x372   : > { %v585_v12 = vpop.permute.xlu1 %584  ;;  %v494_v9 = vadd.f32 %v492_v31, %v460_v55  ;;  %v646_v26 = vstv %s1769_s13  ;;  %v512_v28 = vmul.f32 %v510_v60, %v509_v21  ;;  %v537_v43 = vsel %vm406_vm6, %v1687_v20, 0.0  ;;  %s1851_s13 = scalar_lea.hbm %s1902_s4, %s966_s26 }
 0x373   : > { %v513_v0 = vadd.f32 %v511_v62, %v499_v49  ;;  %v590_v17 = vsel %vm406_vm6, %v585_v12, 0.0  ;;  %v652_v44 = vstv %s1772_s17  ;;  %v540_v42 = vmul.f32 %v538_v63, %v537_v43  ;;  %s1147_s17 = scalar_lea.vmem %s1853_s23, 256 }
 0x374   : > { %v593_v19 = vmul.f32 %v592_v16, %v590_v17  ;;  %v500_v27 = vadd.f32 %v498_v22, %v494_v9  ;;  %v653_v48 = vmul.f32 %v652_v44, %v1482_v45  ;;  %v557_v54 = vsel %vm395_vm5, %v553_v51, 0.0  ;;  %p1148_p4 = scmp.ne.s32.totalorder %s1853_s23, %s1147_s17 }
 0x375   : > { %v541_v5 = vadd.f32 %v539_v6, %v513_v0  ;;  %v666_v55 = vstv %s1782_s14  ;;  %v546_v57 = vmul.f32 %v544_v4, %v1550_v38  ;;  %v560_v59 = vmul.f32 %v558_v10, %v557_v54  ;;  %s1236_s14 = smov [#allocation9]  }
 0x376   : > { %v605_v7 = vpop.permute.xlu1 %604  ;;  %v514_v39 = vadd.f32 %v512_v28, %v500_v27  ;;  %v700_v49 = vstv %s1786_s7  ;;  %v694_v62 = vstv %s1792_s15  ;;  %v714_v10 = vstv %s1800_s29  ;;  %p1149_p12 = pnand %p1148_p4, %p1923_p2  ;;  %s1151_s7 = sshll.u32 %s1236_s14, 4  ;;  %s1152_s7 = int_to_ptr.vmem [resolvable:$false] %s1151_s7 }
 0x377   : > { %v547_v13 = vadd.f32 %v545_v8, %v541_v5  ;;  %v610_v25 = vsel %vm395_vm5, %v605_v7, 0.0  ;;  %v701_v38 = vmul.f32 %v700_v49, %v1461_v34  ;;  %v600_v14 = vmul.f32 %v598_v2, %v1582_v53  ;;  %s1153_s15 = scalar_lea.vmem %s1152_s7, 512  ;;  %p1154_p7 = scmp.lt.s32.totalorder %s1853_s23, %s1152_s7 }
 0x378   : > { %v613_v33 = vmul.f32 %v612_v24, %v610_v25  ;;  %v542_v20 = vadd.f32 %v540_v42, %v514_v39  ;;  %v754_v7 = vstv %s1807_s8  ;;  %v654_v22 = vmul.f32 %v652_v44, %v1489_v46  ;;  %p1150_p0 = pneg %p1149_p12  ;;  %p1155_p11 = scmp.lt.s32.totalorder %s1153_s15, %s1147_s17 }
 0x379   : > { %v561_v18 = vadd.f32 %v559_v15, %v547_v13 }
 0x37a   : > { %v548_v45 = vadd.f32 %v546_v57, %v542_v20  ;;  %p1156_p13 = por %p1155_p11, %p1154_p7 }
 0x37b   : > { %v595_v1 = vadd.f32 %v593_v19, %v561_v18 }
 0x37c   : > { %v562_v51 = vadd.f32 %v560_v59, %v548_v45  ;;  %p1157_p3 = pnand %p1156_p13, %p1150_p0 }
 0x37d   : > { %v601_v29 = vadd.f32 %v599_v23, %v595_v1  ;;  %v748_v1 = vstv %s1805_s16 }
 0x37f   : > { %v615_v40 = vadd.f32 %v613_v33, %v601_v29 }
 0x386   : > { %v639_v30 = vpop.permute.xlu1 %638 }
 0x387   : > { %v644_v32 = vsel %vm406_vm6, %v639_v30, 0.0 }
 0x388   : > { %v647_v36 = vmul.f32 %v646_v26, %v644_v32  ;;  %v768_v32 = vstv %s1815_s9 }
 0x38a   : > { %v659_v41 = vpop.permute.xlu1 %658  ;;  %v649_v47 = vadd.f32 %v647_v36, %v615_v40  ;;  %v702_v40 = vmul.f32 %v700_v49, %v1463_v35 }
 0x38b   : > { %v664_v37 = vsel %vm395_vm5, %v659_v41, 0.0 }
 0x38c   : > { %v655_v60 = vadd.f32 %v653_v48, %v649_v47  ;;  %v667_v61 = vmul.f32 %v666_v55, %v664_v37 }
 0x38e   : > { %v641_v56 = vpop.permute.xlu0 %640  ;;  %v669_v4 = vadd.f32 %v667_v61, %v655_v60  ;;  %v756_v61 = vmul.f32 %v754_v7, %v1514_v52 }
 0x38f   : > { %v645_v17 = vsel %vm406_vm6, %v641_v56, 0.0 }
 0x390   : > { %v648_v21 = vmul.f32 %v646_v26, %v645_v17 }
 0x392   : > { %v687_v63 = vpop.permute.xlu1 %686  ;;  %v587_v3 = vpop.permute.xlu0 %586 }
 0x393   : > { %v692_v0 = vsel %vm406_vm6, %v687_v63, 0.0  ;;  %v591_v6 = vsel %vm406_vm6, %v587_v3, 0.0 }
 0x394   : > { %v695_v5 = vmul.f32 %v694_v62, %v692_v0  ;;  %v594_v8 = vmul.f32 %v592_v16, %v591_v6 }
 0x396   : > { %v697_v11 = vadd.f32 %v695_v5, %v669_v4  ;;  %v596_v12 = vadd.f32 %v594_v8, %v562_v51  ;;  %v707_v13 = vpop.permute.xlu1 %706  ;;  %v607_v15 = vpop.permute.xlu0 %606 }
 0x397   : > { %v712_v34 = vsel %vm395_vm5, %v707_v13, 0.0  ;;  %v611_v31 = vsel %vm395_vm5, %v607_v15, 0.0 }
 0x398   : > { %v703_v16 = vadd.f32 %v701_v38, %v697_v11  ;;  %v715_v18 = vmul.f32 %v714_v10, %v712_v34  ;;  %v602_v19 = vadd.f32 %v600_v14, %v596_v12  ;;  %v614_v9 = vmul.f32 %v612_v24, %v611_v31 }
 0x399   : > { %v755_v24 = vmul.f32 %v754_v7, %v1503_v50 }
 0x39a   : > { %v616_v53 = vadd.f32 %v614_v9, %v602_v19  ;;  %v741_v2 = vpop.permute.xlu1 %740  ;;  %v661_v23 = vpop.permute.xlu0 %660  ;;  %v717_v28 = vadd.f32 %v715_v18, %v703_v16 }
 0x39b   : > { %v746_v25 = vsel %vm406_vm6, %v741_v2, 0.0  ;;  %v665_v27 = vsel %vm395_vm5, %v661_v23, 0.0 }
 0x39c   : > { %v650_v29 = vadd.f32 %v648_v21, %v616_v53  ;;  %v749_v30 = vmul.f32 %v748_v1, %v746_v25  ;;  %v668_v36 = vmul.f32 %v666_v55, %v665_v27 }
 0x39e   : > { %v751_v33 = vadd.f32 %v749_v30, %v717_v28  ;;  %v656_v26 = vadd.f32 %v654_v22, %v650_v29  ;;  %v761_v43 = vpop.permute.xlu1 %760  ;;  %v689_v39 = vpop.permute.xlu0 %688 }
 0x39f   : > { %v766_v46 = vsel %vm395_vm5, %v761_v43, 0.0  ;;  %v693_v44 = vsel %vm406_vm6, %v689_v39, 0.0 }
 0x3a0   : > { %v670_v41 = vadd.f32 %v668_v36, %v656_v26  ;;  %v757_v42 = vadd.f32 %v755_v24, %v751_v33  ;;  %v769_v47 = vmul.f32 %v768_v32, %v766_v46  ;;  %v696_v48 = vmul.f32 %v694_v62, %v693_v44 }
 0x3a2   : > { %v771_v50 = vadd.f32 %v769_v47, %v757_v42  ;;  %v698_v54 = vadd.f32 %v696_v48, %v670_v41  ;;  %v709_v37 = vpop.permute.xlu0 %708 }
 0x3a3   : > { %v713_v55 = vsel %vm395_vm5, %v709_v37, 0.0 }
 0x3a4   : > { %773 = vst.msk [vmem:[%s273_s11] sm:$0xff] %vm292_vm11, %v771_v50  ;;  %v704_v20 = vadd.f32 %v702_v40, %v698_v54  ;;  %v716_v56 = vmul.f32 %v714_v10, %v713_v55 }
 0x3a6   : > { %v743_v57 = vpop.permute.xlu0 %742  ;;  %v718_v59 = vadd.f32 %v716_v56, %v704_v20 }
 0x3a7   : > { %v747_v35 = vsel %vm406_vm6, %v743_v57, 0.0 }
 0x3a8   : > { %v750_v60 = vmul.f32 %v748_v1, %v747_v35 }
 0x3aa   : > { %v752_v49 = vadd.f32 %v750_v60, %v718_v59  ;;  %v763_v62 = vpop.permute.xlu0 %762 }
 0x3ab   : > { %v767_v45 = vsel %vm395_vm5, %v763_v62, 0.0 }
 0x3ac   : > { %v758_v63 = vadd.f32 %v756_v61, %v752_v49  ;;  %v770_v3 = vmul.f32 %v768_v32, %v767_v45 }
 0x3ae   : > { %v772_v52 = vadd.f32 %v770_v3, %v758_v63 }
 0x3b0   : > { %774 = vst.msk [vmem:[%s273_s11 + $0x8] sm:$0xff] %vm292_vm11, %v772_v52 }
 0x3b1   : > { %1160 = shalt.err (!%p1157_p3)
}
 0x3b2   : > { %s1161_s29 = scalar_lea.hbm %s1851_s13, 256  ;;  %s1165_s9 = scalar_lea.hbm %s1902_s4, 512 }
 0x3b3   : > { %p1162_p9 = scmp.ne.s32.totalorder %s1851_s13, %s1161_s29  ;;  %p1166_p5 = scmp.lt.u32.totalorder %s1851_s13, %s1902_s4 }
 0x3b4   : > { %p1167_p8 = scmp.lt.u32.totalorder %s1165_s9, %s1161_s29  ;;  %p1169_p4 = scmp.lt.u32.totalorder %s1161_s29, %s1851_s13 }
 0x3b5   : > { %p1163_p1 = pnand %p1162_p9, %p1923_p2 }
 0x3b6   : > { %p1168_p10 = por %p1167_p8, %p1166_p5 }
 0x3b7   : > { %p1164_p6 = pneg %p1163_p1 }
 0x3b8   : > { %p1170_p12 = por %p1169_p4, %p1168_p10 }
 0x3ba   : > { %p1171_p0 = pnand %p1170_p12, %p1164_p6 }
 0x3bc   : > { %1174 = shalt.err (!%p1171_p0)
}
 0x3bd   : > { %s1237_s26 = smov 128   ;;  %s1238_s28 = smov 8  }
 0x3be   : > { %986 = dma.vmem_to_hbm [thread:$0]  (%p1923_p2), %s1853_s23, 256, %s1851_s13, %s776_s22, %s1237_s26, %s1237_s26, %s1238_s28  }
 0x3bf PF: > { %s821_s10 = sand.u32 1, %s1213_s18   ;;  %p1924_p7 = scmp.ne.s32.totalorder %s1912_s6, 0 }
 0x3c0   : > { %p1925_p11 = scmp.ge.s32.totalorder %s1225_s21, 2  ;;  %s822_s17 = scalar_lea.sflag [#allocation4], %s821_s10 }
 0x3c2   : > { %p1002_p13 = pnand %p1925_p11, %p1924_p7 }
 0x3c4   : > { %1204 = dma.done.wait (!%p1002_p13), %s822_s17, 256  }
 0x3c5   : > { %1206 = vsyncadd (!%p1002_p13), %s822_s17, 4294967040  ;;  %s831_s14 = scalar_lea.sflag [#allocation11], %s821_s10 }
 0x3c6   : > { %1208 = dma.done.wait (!%p1002_p13), %s831_s14, 16  }
 0x3c7   : > { %1210 = vsyncadd (!%p1002_p13), %s831_s14, 4294967280  ;;  %p24_p2 = scmp.ge.s32.totalorder %s1294_s24, 4   ;;  %s1926_s18 = smov %s1217_s19 }
 0x3c8   : > { %s1927_s19 = smov %s1221_s20  ;;  %s1928_s20 = smov %s1306_s27 }
 0x3c9   : > { %s1929_s21 = smov %s1294_s24  ;;  %26 = sbr.rel (!%p24_p2) target bundleno = 9 (0x9), region = 107 }
 0x3d0   :  { %835 = vsyncpa [#allocation3], 1 }
 0x3d1   :  { %837 = vsyncpa [#allocation3 + $0x1], 1 }
 0x3d2   :  { %838 = vsyncpa [#allocation4], 1 }
 0x3d3   :  { %840 = vsyncpa [#allocation4 + $0x1], 1 }
 0x3d4   :  { %841 = vsyncpa [#allocation11], 1 }
 0x3d5   :  { %843 = vsyncpa [#allocation11 + $0x1], 1 }
 0x3d6   :  { %844 = vsyncpa [#allocation5], 1 }
 0x3d7   :  { %846 = vsyncpa [#allocation5 + $0x1], 1 }
 0x3d8   :  { %847 = vsyncpa [#allocation7], 1 }

</bundles_post_ra>
